<compile_context>
chip_gen: v7x
topology: tpu7x:2x2x1
jax: 0.10.0
libtpu: 0.0.40
codegen_flags: <defaults>
</compile_context>

<pallas_src>
import jax
import jax.numpy as jnp
from jax.experimental import pallas as pl
from jax.experimental.pallas import tpu as pltpu

CFG = dict(conv_in=4, conv_out=16, conv_k=8, pool_k=4,
           seq=40, fc1=32, fc2=16, out=1)

L_OUT = CFG["seq"] - CFG["conv_k"] + 1          # 33 valid conv positions
L_POOL = L_OUT // CFG["pool_k"]                 # 8 pooled positions (floor mode)
L_USED = L_POOL * CFG["pool_k"]                 # 32 conv positions the pool consumes
FLAT = CFG["conv_out"] * L_POOL                 # 128 == torch linear_1 in_features


# --------------------------- fused Pallas kernel ----------------------------

def make_fused_kernel(batch):
    """Build the whole-batch fused kernel (batch is static at trace time)."""
    ci, co = CFG["conv_in"], CFG["conv_out"]
    k_sz, p = CFG["conv_k"], CFG["pool_k"]
    fc1 = CFG["fc1"]

    def kernel(x_ref, wc_ref, bc_ref, w1_ref, b1_ref, w2_ref, b2_ref,
               w3_ref, b3_ref, o_ref, patch_ref):
        """Whole batch: Conv1d + ReLU + MaxPool + fc1 + ReLU + fc2 + ReLU + fc3 + sigmoid.

        x_ref : (B, C_in, L)            inputs (NCL, PyTorch layout)
        wc_ref: (C_out, C_in*K)         im2col-folded conv weight, col = k*C_in + c
        bc_ref: (C_out, 1)              conv bias (column)
        w1_ref: (L_POOL, C_out, FC1)    w1_ref[l, c, o] == torch_w1[o, c*L_POOL + l]
        b1_ref: (1, FC1)
        w2_ref: (FC1, FC2), b2_ref: (1, FC2)
        w3_ref: (FC2, 1),   b3_ref: (1, 1)
        o_ref : (B, 1)                  sigmoid outputs
        patch_ref: (C_in*K, B*L_USED)   VMEM scratch: im2col slab for the whole batch
        """
        # ---- im2col slab for the WHOLE batch (static unroll, tiny copies) ----
        # patch[k*C_in + c, b*32 + j] = x[b, c, k + j]
        for b in range(batch):
            for k in range(k_sz):
                patch_ref[k * ci:(k + 1) * ci, b * L_USED:(b + 1) * L_USED] = \
                    x_ref[b, :, k:k + L_USED]

        # ---- conv for the whole batch: ONE lane-dense MXU push (16, B*32) ----
        acc = jnp.dot(wc_ref[...], patch_ref[...],
                      preferred_element_type=jnp.float32)        # (C_out, B*L_USED)
        acc = jnp.maximum(acc + bc_ref[...], 0.0)                # bias + ReLU

        # ---- MaxPool1d(kernel=stride=p, floor) fused with linear_1 ----
        #   h1[b, o] = sum_{c,l} (max_j acc[c, b*32 + p*l + j]) * w1[l, c, o]
        # Contiguous 4-lane window maxes + VPU broadcast-MACs + one sublane
        # reduction per sample; no flatten / concat / relayout of the conv tile.
        w1_tiles = [w1_ref[l] for l in range(L_POOL)]            # hoisted loads
        h1_rows = []
        for b in range(batch):
            h1_acc = jnp.zeros((co, fc1), jnp.float32)
            for l in range(L_POOL):
                s = b * L_USED + l * p
                col = jnp.max(acc[:, s:s + p], axis=1, keepdims=True)   # (C_out, 1)
                h1_acc = h1_acc + col * w1_tiles[l]                      # (C_out, FC1)
            h1_rows.append(jnp.sum(h1_acc, axis=0, keepdims=True))      # (1, FC1)
        h1 = jnp.concatenate(h1_rows, axis=0) + b1_ref[...]             # (B, FC1)
        h1 = jnp.maximum(h1, 0.0)
        # TODO(synk): nn.Dropout1d is identity at inference; training-mode channel
        # dropout (applied after the pool in torch) is not implemented.

        # ---- linear_2 + ReLU + linear_3 + sigmoid, batched across samples ----
        h2 = jnp.maximum(
            jnp.dot(h1, w2_ref[...], preferred_element_type=jnp.float32)
            + b2_ref[...], 0.0)                                          # (B, FC2)
        z = jnp.dot(h2, w3_ref[...],
                    preferred_element_type=jnp.float32) + b3_ref[...]    # (B, 1)
        o_ref[...] = 1.0 / (1.0 + jnp.exp(-z))                           # sigmoid

    return kernel


# --------------------------- wrapper (glue) ---------------------------------

def prepare_params(params):
    """One-time weight plumbing, hoisted out of the jitted forward."""
    conv_w, conv_b, w1, b1, w2, b2, w3, b3 = params
    co, ci, k = CFG["conv_out"], CFG["conv_in"], CFG["conv_k"]
    wc = jnp.transpose(conv_w, (0, 2, 1)).reshape(co, k * ci)    # col index = k*C_in + c
    bc = conv_b.reshape(co, 1)
    w1r = w1.reshape(CFG["fc1"], co, L_POOL).transpose(2, 1, 0)  # (L_POOL, C_out, FC1)
    return (wc, bc, w1r, b1.reshape(1, -1), w2.T, b2.reshape(1, -1),
            w3.T, b3.reshape(1, -1))


@jax.jit
def simple_cnn_forward(x, prepped):
    """x: (B, C_in, L) float32 (PyTorch NCL). Returns (B, 1) sigmoid outputs."""
    B = x.shape[0]
    wc, bc, w1r, b1, w2t, b2, w3t, b3 = prepped
    vmem = lambda: pl.BlockSpec(memory_space=pltpu.MemorySpace.VMEM)
    return pl.pallas_call(
        make_fused_kernel(B),
        out_shape=jax.ShapeDtypeStruct((B, CFG["out"]), jnp.float32),
        in_specs=[vmem() for _ in range(9)],       # whole arrays, VMEM-resident once
        out_specs=vmem(),
        scratch_shapes=[pltpu.VMEM((CFG["conv_in"] * CFG["conv_k"], B * L_USED),
                                   jnp.float32)],
    )(x, wc, bc, w1r, b1, w2t, b2, w3t, b3)


# --------------------------- params & reference -----------------------------

def init_params(key):
    ks = jax.random.split(key, 8)

    def u(k, shape, fan_in):
        bound = 1.0 / jnp.sqrt(jnp.float32(fan_in))
        return jax.random.uniform(k, shape, jnp.float32, -bound, bound)

    c_fan = CFG["conv_in"] * CFG["conv_k"]
    conv_w = u(ks[0], (CFG["conv_out"], CFG["conv_in"], CFG["conv_k"]), c_fan)
    conv_b = u(ks[1], (CFG["conv_out"],), c_fan)
    w1 = u(ks[2], (CFG["fc1"], FLAT), FLAT)
    b1 = u(ks[3], (CFG["fc1"],), FLAT)
    w2 = u(ks[4], (CFG["fc2"], CFG["fc1"]), CFG["fc1"])
    b2 = u(ks[5], (CFG["fc2"],), CFG["fc1"])
    w3 = u(ks[6], (CFG["out"], CFG["fc2"]), CFG["fc2"])
    b3 = u(ks[7], (CFG["out"],), CFG["fc2"])
    return (conv_w, conv_b, w1, b1, w2, b2, w3, b3)


def reference(x, params):
    """Pure-JAX reference mirroring the PyTorch forward (vectorized over batch)."""
    conv_w, conv_b, w1, b1, w2, b2, w3, b3 = params
    y = jax.lax.conv_general_dilated(
        x, conv_w, window_strides=(1,), padding="VALID",
        dimension_numbers=("NCH", "OIH", "NCH"))                 # (B, C_out, L_OUT)
    y = jax.nn.relu(y + conv_b[None, :, None])
    p = CFG["pool_k"]
    y = y[:, :, : L_POOL * p].reshape(-1, CFG["conv_out"], L_POOL, p).max(-1)
    flat = y.reshape(-1, FLAT)                                   # torch .view order per sample
    h1 = jax.nn.relu(flat @ w1.T + b1)
    h2 = jax.nn.relu(h1 @ w2.T + b2)
    return jax.nn.sigmoid(h2 @ w3.T + b3)                        # (B, 1)


# --------------------------- main -------------------------------------------

if __name__ == "__main__":
    key = jax.random.PRNGKey(0)
    pkey, xkey = jax.random.split(key)
    params = init_params(pkey)
    prepped = prepare_params(params)      # one-time weight prep, outside the jitted path

    B = 4                                 # whole batch handled in one kernel invocation
    x = jax.random.uniform(xkey, (B, CFG["conv_in"], CFG["seq"]), jnp.float32)

    out = jax.block_until_ready(simple_cnn_forward(x, prepped))
    ref = reference(x, params)

    assert out.shape == (B, CFG["out"])
    assert bool(jnp.all(jnp.isfinite(out)))
    assert bool(jnp.allclose(out, ref, atol=1e-5, rtol=1e-5)), (out, ref)
    print("KERNEL_OK")
</pallas_src>

<mosaic_0001>
module attributes {stable_mosaic.version = 11 : i64} {
  func.func @kernel(%arg0: memref<4x4x40xf32, #tpu.memory_space<vmem>>, %arg1: memref<16x32xf32, #tpu.memory_space<vmem>>, %arg2: memref<16x1xf32, #tpu.memory_space<vmem>>, %arg3: memref<8x16x32xf32, #tpu.memory_space<vmem>>, %arg4: memref<1x32xf32, #tpu.memory_space<vmem>>, %arg5: memref<32x16xf32, #tpu.memory_space<vmem>>, %arg6: memref<1x16xf32, #tpu.memory_space<vmem>>, %arg7: memref<16x1xf32, #tpu.memory_space<vmem>>, %arg8: memref<1x1xf32, #tpu.memory_space<vmem>>, %arg9: memref<4x1xf32, #tpu.memory_space<vmem>>, %arg10: memref<32x128xf32, #tpu.memory_space<vmem>>) attributes {dimension_semantics = [], scalar_prefetch = 0 : i64, scratch_operands = 1 : i64, tpu.core_type = #tpu.core_type<tc>} {
    %c0 = arith.constant 0 : index
    %c0_0 = arith.constant 0 : index
    %c0_1 = arith.constant 0 : index
    %0 = vector.load %arg0[%c0, %c0_0, %c0_1] : memref<4x4x40xf32, #tpu.memory_space<vmem>>, vector<1x4x32xf32>
    %1 = vector.shape_cast %0 : vector<1x4x32xf32> to vector<4x32xf32>
    %c0_2 = arith.constant 0 : index
    %c0_3 = arith.constant 0 : index
    %2 = vector.load %arg10[%c0_2, %c0_3] : memref<32x128xf32, #tpu.memory_space<vmem>>, vector<4x32xf32>
    tpu.vector_store %arg10[%c0_2, %c0_3], %1 {strides = array<i32>} : memref<32x128xf32, #tpu.memory_space<vmem>>, vector<4x32xf32>,
    %c0_4 = arith.constant 0 : index
    %c0_5 = arith.constant 0 : index
    %c1 = arith.constant 1 : index
    %3 = vector.load %arg0[%c0_4, %c0_5, %c1] : memref<4x4x40xf32, #tpu.memory_space<vmem>>, vector<1x4x32xf32>
    %4 = vector.shape_cast %3 : vector<1x4x32xf32> to vector<4x32xf32>
    %c4 = arith.constant 4 : index
    %c0_6 = arith.constant 0 : index
    %5 = vector.load %arg10[%c4, %c0_6] : memref<32x128xf32, #tpu.memory_space<vmem>>, vector<4x32xf32>
    tpu.vector_store %arg10[%c4, %c0_6], %4 {strides = array<i32>} : memref<32x128xf32, #tpu.memory_space<vmem>>, vector<4x32xf32>,
    %c0_7 = arith.constant 0 : index
    %c0_8 = arith.constant 0 : index
    %c2 = arith.constant 2 : index
    %6 = vector.load %arg0[%c0_7, %c0_8, %c2] : memref<4x4x40xf32, #tpu.memory_space<vmem>>, vector<1x4x32xf32>
    %7 = vector.shape_cast %6 : vector<1x4x32xf32> to vector<4x32xf32>
    %c8 = arith.constant 8 : index
    %c0_9 = arith.constant 0 : index
    %8 = vector.load %arg10[%c8, %c0_9] : memref<32x128xf32, #tpu.memory_space<vmem>>, vector<4x32xf32>
    tpu.vector_store %arg10[%c8, %c0_9], %7 {strides = array<i32>} : memref<32x128xf32, #tpu.memory_space<vmem>>, vector<4x32xf32>,
    %c0_10 = arith.constant 0 : index
    %c0_11 = arith.constant 0 : index
    %c3 = arith.constant 3 : index
    %9 = vector.load %arg0[%c0_10, %c0_11, %c3] : memref<4x4x40xf32, #tpu.memory_space<vmem>>, vector<1x4x32xf32>
    %10 = vector.shape_cast %9 : vector<1x4x32xf32> to vector<4x32xf32>
    %c12 = arith.constant 12 : index
    %c0_12 = arith.constant 0 : index
    %11 = vector.load %arg10[%c12, %c0_12] : memref<32x128xf32, #tpu.memory_space<vmem>>, vector<4x32xf32>
    tpu.vector_store %arg10[%c12, %c0_12], %10 {strides = array<i32>} : memref<32x128xf32, #tpu.memory_space<vmem>>, vector<4x32xf32>,
    %c0_13 = arith.constant 0 : index
    %c0_14 = arith.constant 0 : index
    %c4_15 = arith.constant 4 : index
    %12 = vector.load %arg0[%c0_13, %c0_14, %c4_15] : memref<4x4x40xf32, #tpu.memory_space<vmem>>, vector<1x4x32xf32>
    %13 = vector.shape_cast %12 : vector<1x4x32xf32> to vector<4x32xf32>
    %c16 = arith.constant 16 : index
    %c0_16 = arith.constant 0 : index
    %14 = vector.load %arg10[%c16, %c0_16] : memref<32x128xf32, #tpu.memory_space<vmem>>, vector<4x32xf32>
    tpu.vector_store %arg10[%c16, %c0_16], %13 {strides = array<i32>} : memref<32x128xf32, #tpu.memory_space<vmem>>, vector<4x32xf32>,
    %c0_17 = arith.constant 0 : index
    %c0_18 = arith.constant 0 : index
    %c5 = arith.constant 5 : index
    %15 = vector.load %arg0[%c0_17, %c0_18, %c5] : memref<4x4x40xf32, #tpu.memory_space<vmem>>, vector<1x4x32xf32>
    %16 = vector.shape_cast %15 : vector<1x4x32xf32> to vector<4x32xf32>
    %c20 = arith.constant 20 : index
    %c0_19 = arith.constant 0 : index
    %17 = vector.load %arg10[%c20, %c0_19] : memref<32x128xf32, #tpu.memory_space<vmem>>, vector<4x32xf32>
    tpu.vector_store %arg10[%c20, %c0_19], %16 {strides = array<i32>} : memref<32x128xf32, #tpu.memory_space<vmem>>, vector<4x32xf32>,
    %c0_20 = arith.constant 0 : index
    %c0_21 = arith.constant 0 : index
    %c6 = arith.constant 6 : index
    %18 = vector.load %arg0[%c0_20, %c0_21, %c6] : memref<4x4x40xf32, #tpu.memory_space<vmem>>, vector<1x4x32xf32>
    %19 = vector.shape_cast %18 : vector<1x4x32xf32> to vector<4x32xf32>
    %c24 = arith.constant 24 : index
    %c0_22 = arith.constant 0 : index
    %20 = vector.load %arg10[%c24, %c0_22] : memref<32x128xf32, #tpu.memory_space<vmem>>, vector<4x32xf32>
    tpu.vector_store %arg10[%c24, %c0_22], %19 {strides = array<i32>} : memref<32x128xf32, #tpu.memory_space<vmem>>, vector<4x32xf32>,
    %c0_23 = arith.constant 0 : index
    %c0_24 = arith.constant 0 : index
    %c7 = arith.constant 7 : index
    %21 = vector.load %arg0[%c0_23, %c0_24, %c7] : memref<4x4x40xf32, #tpu.memory_space<vmem>>, vector<1x4x32xf32>
    %22 = vector.shape_cast %21 : vector<1x4x32xf32> to vector<4x32xf32>
    %c28 = arith.constant 28 : index
    %c0_25 = arith.constant 0 : index
    %23 = vector.load %arg10[%c28, %c0_25] : memref<32x128xf32, #tpu.memory_space<vmem>>, vector<4x32xf32>
    tpu.vector_store %arg10[%c28, %c0_25], %22 {strides = array<i32>} : memref<32x128xf32, #tpu.memory_space<vmem>>, vector<4x32xf32>,
    %c1_26 = arith.constant 1 : index
    %c0_27 = arith.constant 0 : index
    %c0_28 = arith.constant 0 : index
    %24 = vector.load %arg0[%c1_26, %c0_27, %c0_28] : memref<4x4x40xf32, #tpu.memory_space<vmem>>, vector<1x4x32xf32>
    %25 = vector.shape_cast %24 : vector<1x4x32xf32> to vector<4x32xf32>
    %c0_29 = arith.constant 0 : index
    %c32 = arith.constant 32 : index
    %26 = vector.load %arg10[%c0_29, %c32] : memref<32x128xf32, #tpu.memory_space<vmem>>, vector<4x32xf32>
    tpu.vector_store %arg10[%c0_29, %c32], %25 {strides = array<i32>} : memref<32x128xf32, #tpu.memory_space<vmem>>, vector<4x32xf32>,
    %c1_30 = arith.constant 1 : index
    %c0_31 = arith.constant 0 : index
    %c1_32 = arith.constant 1 : index
    %27 = vector.load %arg0[%c1_30, %c0_31, %c1_32] : memref<4x4x40xf32, #tpu.memory_space<vmem>>, vector<1x4x32xf32>
    %28 = vector.shape_cast %27 : vector<1x4x32xf32> to vector<4x32xf32>
    %c4_33 = arith.constant 4 : index
    %c32_34 = arith.constant 32 : index
    %29 = vector.load %arg10[%c4_33, %c32_34] : memref<32x128xf32, #tpu.memory_space<vmem>>, vector<4x32xf32>
    tpu.vector_store %arg10[%c4_33, %c32_34], %28 {strides = array<i32>} : memref<32x128xf32, #tpu.memory_space<vmem>>, vector<4x32xf32>,
    %c1_35 = arith.constant 1 : index
    %c0_36 = arith.constant 0 : index
    %c2_37 = arith.constant 2 : index
    %30 = vector.load %arg0[%c1_35, %c0_36, %c2_37] : memref<4x4x40xf32, #tpu.memory_space<vmem>>, vector<1x4x32xf32>
    %31 = vector.shape_cast %30 : vector<1x4x32xf32> to vector<4x32xf32>
    %c8_38 = arith.constant 8 : index
    %c32_39 = arith.constant 32 : index
    %32 = vector.load %arg10[%c8_38, %c32_39] : memref<32x128xf32, #tpu.memory_space<vmem>>, vector<4x32xf32>
    tpu.vector_store %arg10[%c8_38, %c32_39], %31 {strides = array<i32>} : memref<32x128xf32, #tpu.memory_space<vmem>>, vector<4x32xf32>,
    %c1_40 = arith.constant 1 : index
    %c0_41 = arith.constant 0 : index
    %c3_42 = arith.constant 3 : index
    %33 = vector.load %arg0[%c1_40, %c0_41, %c3_42] : memref<4x4x40xf32, #tpu.memory_space<vmem>>, vector<1x4x32xf32>
    %34 = vector.shape_cast %33 : vector<1x4x32xf32> to vector<4x32xf32>
    %c12_43 = arith.constant 12 : index
    %c32_44 = arith.constant 32 : index
    %35 = vector.load %arg10[%c12_43, %c32_44] : memref<32x128xf32, #tpu.memory_space<vmem>>, vector<4x32xf32>
    tpu.vector_store %arg10[%c12_43, %c32_44], %34 {strides = array<i32>} : memref<32x128xf32, #tpu.memory_space<vmem>>, vector<4x32xf32>,
    %c1_45 = arith.constant 1 : index
    %c0_46 = arith.constant 0 : index
    %c4_47 = arith.constant 4 : index
    %36 = vector.load %arg0[%c1_45, %c0_46, %c4_47] : memref<4x4x40xf32, #tpu.memory_space<vmem>>, vector<1x4x32xf32>
    %37 = vector.shape_cast %36 : vector<1x4x32xf32> to vector<4x32xf32>
    %c16_48 = arith.constant 16 : index
    %c32_49 = arith.constant 32 : index
    %38 = vector.load %arg10[%c16_48, %c32_49] : memref<32x128xf32, #tpu.memory_space<vmem>>, vector<4x32xf32>
    tpu.vector_store %arg10[%c16_48, %c32_49], %37 {strides = array<i32>} : memref<32x128xf32, #tpu.memory_space<vmem>>, vector<4x32xf32>,
    %c1_50 = arith.constant 1 : index
    %c0_51 = arith.constant 0 : index
    %c5_52 = arith.constant 5 : index
    %39 = vector.load %arg0[%c1_50, %c0_51, %c5_52] : memref<4x4x40xf32, #tpu.memory_space<vmem>>, vector<1x4x32xf32>
    %40 = vector.shape_cast %39 : vector<1x4x32xf32> to vector<4x32xf32>
    %c20_53 = arith.constant 20 : index
    %c32_54 = arith.constant 32 : index
    %41 = vector.load %arg10[%c20_53, %c32_54] : memref<32x128xf32, #tpu.memory_space<vmem>>, vector<4x32xf32>
    tpu.vector_store %arg10[%c20_53, %c32_54], %40 {strides = array<i32>} : memref<32x128xf32, #tpu.memory_space<vmem>>, vector<4x32xf32>,
    %c1_55 = arith.constant 1 : index
    %c0_56 = arith.constant 0 : index
    %c6_57 = arith.constant 6 : index
    %42 = vector.load %arg0[%c1_55, %c0_56, %c6_57] : memref<4x4x40xf32, #tpu.memory_space<vmem>>, vector<1x4x32xf32>
    %43 = vector.shape_cast %42 : vector<1x4x32xf32> to vector<4x32xf32>
    %c24_58 = arith.constant 24 : index
    %c32_59 = arith.constant 32 : index
    %44 = vector.load %arg10[%c24_58, %c32_59] : memref<32x128xf32, #tpu.memory_space<vmem>>, vector<4x32xf32>
    tpu.vector_store %arg10[%c24_58, %c32_59], %43 {strides = array<i32>} : memref<32x128xf32, #tpu.memory_space<vmem>>, vector<4x32xf32>,
    %c1_60 = arith.constant 1 : index
    %c0_61 = arith.constant 0 : index
    %c7_62 = arith.constant 7 : index
    %45 = vector.load %arg0[%c1_60, %c0_61, %c7_62] : memref<4x4x40xf32, #tpu.memory_space<vmem>>, vector<1x4x32xf32>
    %46 = vector.shape_cast %45 : vector<1x4x32xf32> to vector<4x32xf32>
    %c28_63 = arith.constant 28 : index
    %c32_64 = arith.constant 32 : index
    %47 = vector.load %arg10[%c28_63, %c32_64] : memref<32x128xf32, #tpu.memory_space<vmem>>, vector<4x32xf32>
    tpu.vector_store %arg10[%c28_63, %c32_64], %46 {strides = array<i32>} : memref<32x128xf32, #tpu.memory_space<vmem>>, vector<4x32xf32>,
    %c2_65 = arith.constant 2 : index
    %c0_66 = arith.constant 0 : index
    %c0_67 = arith.constant 0 : index
    %48 = vector.load %arg0[%c2_65, %c0_66, %c0_67] : memref<4x4x40xf32, #tpu.memory_space<vmem>>, vector<1x4x32xf32>
    %49 = vector.shape_cast %48 : vector<1x4x32xf32> to vector<4x32xf32>
    %c0_68 = arith.constant 0 : index
    %c64 = arith.constant 64 : index
    %50 = vector.load %arg10[%c0_68, %c64] : memref<32x128xf32, #tpu.memory_space<vmem>>, vector<4x32xf32>
    tpu.vector_store %arg10[%c0_68, %c64], %49 {strides = array<i32>} : memref<32x128xf32, #tpu.memory_space<vmem>>, vector<4x32xf32>,
    %c2_69 = arith.constant 2 : index
    %c0_70 = arith.constant 0 : index
    %c1_71 = arith.constant 1 : index
    %51 = vector.load %arg0[%c2_69, %c0_70, %c1_71] : memref<4x4x40xf32, #tpu.memory_space<vmem>>, vector<1x4x32xf32>
    %52 = vector.shape_cast %51 : vector<1x4x32xf32> to vector<4x32xf32>
    %c4_72 = arith.constant 4 : index
    %c64_73 = arith.constant 64 : index
    %53 = vector.load %arg10[%c4_72, %c64_73] : memref<32x128xf32, #tpu.memory_space<vmem>>, vector<4x32xf32>
    tpu.vector_store %arg10[%c4_72, %c64_73], %52 {strides = array<i32>} : memref<32x128xf32, #tpu.memory_space<vmem>>, vector<4x32xf32>,
    %c2_74 = arith.constant 2 : index
    %c0_75 = arith.constant 0 : index
    %c2_76 = arith.constant 2 : index
    %54 = vector.load %arg0[%c2_74, %c0_75, %c2_76] : memref<4x4x40xf32, #tpu.memory_space<vmem>>, vector<1x4x32xf32>
    %55 = vector.shape_cast %54 : vector<1x4x32xf32> to vector<4x32xf32>
    %c8_77 = arith.constant 8 : index
    %c64_78 = arith.constant 64 : index
    %56 = vector.load %arg10[%c8_77, %c64_78] : memref<32x128xf32, #tpu.memory_space<vmem>>, vector<4x32xf32>
    tpu.vector_store %arg10[%c8_77, %c64_78], %55 {strides = array<i32>} : memref<32x128xf32, #tpu.memory_space<vmem>>, vector<4x32xf32>,
    %c2_79 = arith.constant 2 : index
    %c0_80 = arith.constant 0 : index
    %c3_81 = arith.constant 3 : index
    %57 = vector.load %arg0[%c2_79, %c0_80, %c3_81] : memref<4x4x40xf32, #tpu.memory_space<vmem>>, vector<1x4x32xf32>
    %58 = vector.shape_cast %57 : vector<1x4x32xf32> to vector<4x32xf32>
    %c12_82 = arith.constant 12 : index
    %c64_83 = arith.constant 64 : index
    %59 = vector.load %arg10[%c12_82, %c64_83] : memref<32x128xf32, #tpu.memory_space<vmem>>, vector<4x32xf32>
    tpu.vector_store %arg10[%c12_82, %c64_83], %58 {strides = array<i32>} : memref<32x128xf32, #tpu.memory_space<vmem>>, vector<4x32xf32>,
    %c2_84 = arith.constant 2 : index
    %c0_85 = arith.constant 0 : index
    %c4_86 = arith.constant 4 : index
    %60 = vector.load %arg0[%c2_84, %c0_85, %c4_86] : memref<4x4x40xf32, #tpu.memory_space<vmem>>, vector<1x4x32xf32>
    %61 = vector.shape_cast %60 : vector<1x4x32xf32> to vector<4x32xf32>
    %c16_87 = arith.constant 16 : index
    %c64_88 = arith.constant 64 : index
    %62 = vector.load %arg10[%c16_87, %c64_88] : memref<32x128xf32, #tpu.memory_space<vmem>>, vector<4x32xf32>
    tpu.vector_store %arg10[%c16_87, %c64_88], %61 {strides = array<i32>} : memref<32x128xf32, #tpu.memory_space<vmem>>, vector<4x32xf32>,
    %c2_89 = arith.constant 2 : index
    %c0_90 = arith.constant 0 : index
    %c5_91 = arith.constant 5 : index
    %63 = vector.load %arg0[%c2_89, %c0_90, %c5_91] : memref<4x4x40xf32, #tpu.memory_space<vmem>>, vector<1x4x32xf32>
    %64 = vector.shape_cast %63 : vector<1x4x32xf32> to vector<4x32xf32>
    %c20_92 = arith.constant 20 : index
    %c64_93 = arith.constant 64 : index
    %65 = vector.load %arg10[%c20_92, %c64_93] : memref<32x128xf32, #tpu.memory_space<vmem>>, vector<4x32xf32>
    tpu.vector_store %arg10[%c20_92, %c64_93], %64 {strides = array<i32>} : memref<32x128xf32, #tpu.memory_space<vmem>>, vector<4x32xf32>,
    %c2_94 = arith.constant 2 : index
    %c0_95 = arith.constant 0 : index
    %c6_96 = arith.constant 6 : index
    %66 = vector.load %arg0[%c2_94, %c0_95, %c6_96] : memref<4x4x40xf32, #tpu.memory_space<vmem>>, vector<1x4x32xf32>
    %67 = vector.shape_cast %66 : vector<1x4x32xf32> to vector<4x32xf32>
    %c24_97 = arith.constant 24 : index
    %c64_98 = arith.constant 64 : index
    %68 = vector.load %arg10[%c24_97, %c64_98] : memref<32x128xf32, #tpu.memory_space<vmem>>, vector<4x32xf32>
    tpu.vector_store %arg10[%c24_97, %c64_98], %67 {strides = array<i32>} : memref<32x128xf32, #tpu.memory_space<vmem>>, vector<4x32xf32>,
    %c2_99 = arith.constant 2 : index
    %c0_100 = arith.constant 0 : index
    %c7_101 = arith.constant 7 : index
    %69 = vector.load %arg0[%c2_99, %c0_100, %c7_101] : memref<4x4x40xf32, #tpu.memory_space<vmem>>, vector<1x4x32xf32>
    %70 = vector.shape_cast %69 : vector<1x4x32xf32> to vector<4x32xf32>
    %c28_102 = arith.constant 28 : index
    %c64_103 = arith.constant 64 : index
    %71 = vector.load %arg10[%c28_102, %c64_103] : memref<32x128xf32, #tpu.memory_space<vmem>>, vector<4x32xf32>
    tpu.vector_store %arg10[%c28_102, %c64_103], %70 {strides = array<i32>} : memref<32x128xf32, #tpu.memory_space<vmem>>, vector<4x32xf32>,
    %c3_104 = arith.constant 3 : index
    %c0_105 = arith.constant 0 : index
    %c0_106 = arith.constant 0 : index
    %72 = vector.load %arg0[%c3_104, %c0_105, %c0_106] : memref<4x4x40xf32, #tpu.memory_space<vmem>>, vector<1x4x32xf32>
    %73 = vector.shape_cast %72 : vector<1x4x32xf32> to vector<4x32xf32>
    %c0_107 = arith.constant 0 : index
    %c96 = arith.constant 96 : index
    %74 = vector.load %arg10[%c0_107, %c96] : memref<32x128xf32, #tpu.memory_space<vmem>>, vector<4x32xf32>
    tpu.vector_store %arg10[%c0_107, %c96], %73 {strides = array<i32>} : memref<32x128xf32, #tpu.memory_space<vmem>>, vector<4x32xf32>,
    %c3_108 = arith.constant 3 : index
    %c0_109 = arith.constant 0 : index
    %c1_110 = arith.constant 1 : index
    %75 = vector.load %arg0[%c3_108, %c0_109, %c1_110] : memref<4x4x40xf32, #tpu.memory_space<vmem>>, vector<1x4x32xf32>
    %76 = vector.shape_cast %75 : vector<1x4x32xf32> to vector<4x32xf32>
    %c4_111 = arith.constant 4 : index
    %c96_112 = arith.constant 96 : index
    %77 = vector.load %arg10[%c4_111, %c96_112] : memref<32x128xf32, #tpu.memory_space<vmem>>, vector<4x32xf32>
    tpu.vector_store %arg10[%c4_111, %c96_112], %76 {strides = array<i32>} : memref<32x128xf32, #tpu.memory_space<vmem>>, vector<4x32xf32>,
    %c3_113 = arith.constant 3 : index
    %c0_114 = arith.constant 0 : index
    %c2_115 = arith.constant 2 : index
    %78 = vector.load %arg0[%c3_113, %c0_114, %c2_115] : memref<4x4x40xf32, #tpu.memory_space<vmem>>, vector<1x4x32xf32>
    %79 = vector.shape_cast %78 : vector<1x4x32xf32> to vector<4x32xf32>
    %c8_116 = arith.constant 8 : index
    %c96_117 = arith.constant 96 : index
    %80 = vector.load %arg10[%c8_116, %c96_117] : memref<32x128xf32, #tpu.memory_space<vmem>>, vector<4x32xf32>
    tpu.vector_store %arg10[%c8_116, %c96_117], %79 {strides = array<i32>} : memref<32x128xf32, #tpu.memory_space<vmem>>, vector<4x32xf32>,
    %c3_118 = arith.constant 3 : index
    %c0_119 = arith.constant 0 : index
    %c3_120 = arith.constant 3 : index
    %81 = vector.load %arg0[%c3_118, %c0_119, %c3_120] : memref<4x4x40xf32, #tpu.memory_space<vmem>>, vector<1x4x32xf32>
    %82 = vector.shape_cast %81 : vector<1x4x32xf32> to vector<4x32xf32>
    %c12_121 = arith.constant 12 : index
    %c96_122 = arith.constant 96 : index
    %83 = vector.load %arg10[%c12_121, %c96_122] : memref<32x128xf32, #tpu.memory_space<vmem>>, vector<4x32xf32>
    tpu.vector_store %arg10[%c12_121, %c96_122], %82 {strides = array<i32>} : memref<32x128xf32, #tpu.memory_space<vmem>>, vector<4x32xf32>,
    %c3_123 = arith.constant 3 : index
    %c0_124 = arith.constant 0 : index
    %c4_125 = arith.constant 4 : index
    %84 = vector.load %arg0[%c3_123, %c0_124, %c4_125] : memref<4x4x40xf32, #tpu.memory_space<vmem>>, vector<1x4x32xf32>
    %85 = vector.shape_cast %84 : vector<1x4x32xf32> to vector<4x32xf32>
    %c16_126 = arith.constant 16 : index
    %c96_127 = arith.constant 96 : index
    %86 = vector.load %arg10[%c16_126, %c96_127] : memref<32x128xf32, #tpu.memory_space<vmem>>, vector<4x32xf32>
    tpu.vector_store %arg10[%c16_126, %c96_127], %85 {strides = array<i32>} : memref<32x128xf32, #tpu.memory_space<vmem>>, vector<4x32xf32>,
    %c3_128 = arith.constant 3 : index
    %c0_129 = arith.constant 0 : index
    %c5_130 = arith.constant 5 : index
    %87 = vector.load %arg0[%c3_128, %c0_129, %c5_130] : memref<4x4x40xf32, #tpu.memory_space<vmem>>, vector<1x4x32xf32>
    %88 = vector.shape_cast %87 : vector<1x4x32xf32> to vector<4x32xf32>
    %c20_131 = arith.constant 20 : index
    %c96_132 = arith.constant 96 : index
    %89 = vector.load %arg10[%c20_131, %c96_132] : memref<32x128xf32, #tpu.memory_space<vmem>>, vector<4x32xf32>
    tpu.vector_store %arg10[%c20_131, %c96_132], %88 {strides = array<i32>} : memref<32x128xf32, #tpu.memory_space<vmem>>, vector<4x32xf32>,
    %c3_133 = arith.constant 3 : index
    %c0_134 = arith.constant 0 : index
    %c6_135 = arith.constant 6 : index
    %90 = vector.load %arg0[%c3_133, %c0_134, %c6_135] : memref<4x4x40xf32, #tpu.memory_space<vmem>>, vector<1x4x32xf32>
    %91 = vector.shape_cast %90 : vector<1x4x32xf32> to vector<4x32xf32>
    %c24_136 = arith.constant 24 : index
    %c96_137 = arith.constant 96 : index
    %92 = vector.load %arg10[%c24_136, %c96_137] : memref<32x128xf32, #tpu.memory_space<vmem>>, vector<4x32xf32>
    tpu.vector_store %arg10[%c24_136, %c96_137], %91 {strides = array<i32>} : memref<32x128xf32, #tpu.memory_space<vmem>>, vector<4x32xf32>,
    %c3_138 = arith.constant 3 : index
    %c0_139 = arith.constant 0 : index
    %c7_140 = arith.constant 7 : index
    %93 = vector.load %arg0[%c3_138, %c0_139, %c7_140] : memref<4x4x40xf32, #tpu.memory_space<vmem>>, vector<1x4x32xf32>
    %94 = vector.shape_cast %93 : vector<1x4x32xf32> to vector<4x32xf32>
    %c28_141 = arith.constant 28 : index
    %c96_142 = arith.constant 96 : index
    %95 = vector.load %arg10[%c28_141, %c96_142] : memref<32x128xf32, #tpu.memory_space<vmem>>, vector<4x32xf32>
    tpu.vector_store %arg10[%c28_141, %c96_142], %94 {strides = array<i32>} : memref<32x128xf32, #tpu.memory_space<vmem>>, vector<4x32xf32>,
    %c0_143 = arith.constant 0 : index
    %c0_144 = arith.constant 0 : index
    %96 = vector.load %arg1[%c0_143, %c0_144] : memref<16x32xf32, #tpu.memory_space<vmem>>, vector<16x32xf32>
    %c0_145 = arith.constant 0 : index
    %c0_146 = arith.constant 0 : index
    %97 = vector.load %arg10[%c0_145, %c0_146] : memref<32x128xf32, #tpu.memory_space<vmem>>, vector<32x128xf32>
    %cst = arith.constant dense<0.000000e+00> : vector<16x128xf32>
    %98 = tpu.matmul %96, %97, %cst {dimension_numbers = #tpu.dot_dimension_numbers<[1], [0], [0], [1], [0, 0, 1, 1], [], []>} : vector<16x32xf32>, vector<32x128xf32>, vector<16x128xf32> -> vector<16x128xf32>
    %c0_147 = arith.constant 0 : index
    %c0_148 = arith.constant 0 : index
    %99 = vector.load %arg2[%c0_147, %c0_148] : memref<16x1xf32, #tpu.memory_space<vmem>>, vector<16x1xf32>
    %100 = vector.broadcast %99 : vector<16x1xf32> to vector<16x128xf32>
    %101 = arith.addf %98, %100 : vector<16x128xf32>
    %cst_149 = arith.constant 0.000000e+00 : f32
    %102 = vector.broadcast %cst_149 : f32 to vector<16x128xf32>
    %103 = arith.maximumf %101, %102 : vector<16x128xf32>
    %c0_150 = arith.constant 0 : index
    %c0_151 = arith.constant 0 : index
    %c0_152 = arith.constant 0 : index
    %104 = vector.load %arg3[%c0_150, %c0_151, %c0_152] : memref<8x16x32xf32, #tpu.memory_space<vmem>>, vector<1x16x32xf32>
    %105 = vector.shape_cast %104 : vector<1x16x32xf32> to vector<16x32xf32>
    %c1_153 = arith.constant 1 : index
    %c0_154 = arith.constant 0 : index
    %c0_155 = arith.constant 0 : index
    %106 = vector.load %arg3[%c1_153, %c0_154, %c0_155] : memref<8x16x32xf32, #tpu.memory_space<vmem>>, vector<1x16x32xf32>
    %107 = vector.shape_cast %106 : vector<1x16x32xf32> to vector<16x32xf32>
    %c2_156 = arith.constant 2 : index
    %c0_157 = arith.constant 0 : index
    %c0_158 = arith.constant 0 : index
    %108 = vector.load %arg3[%c2_156, %c0_157, %c0_158] : memref<8x16x32xf32, #tpu.memory_space<vmem>>, vector<1x16x32xf32>
    %109 = vector.shape_cast %108 : vector<1x16x32xf32> to vector<16x32xf32>
    %c3_159 = arith.constant 3 : index
    %c0_160 = arith.constant 0 : index
    %c0_161 = arith.constant 0 : index
    %110 = vector.load %arg3[%c3_159, %c0_160, %c0_161] : memref<8x16x32xf32, #tpu.memory_space<vmem>>, vector<1x16x32xf32>
    %111 = vector.shape_cast %110 : vector<1x16x32xf32> to vector<16x32xf32>
    %c4_162 = arith.constant 4 : index
    %c0_163 = arith.constant 0 : index
    %c0_164 = arith.constant 0 : index
    %112 = vector.load %arg3[%c4_162, %c0_163, %c0_164] : memref<8x16x32xf32, #tpu.memory_space<vmem>>, vector<1x16x32xf32>
    %113 = vector.shape_cast %112 : vector<1x16x32xf32> to vector<16x32xf32>
    %c5_165 = arith.constant 5 : index
    %c0_166 = arith.constant 0 : index
    %c0_167 = arith.constant 0 : index
    %114 = vector.load %arg3[%c5_165, %c0_166, %c0_167] : memref<8x16x32xf32, #tpu.memory_space<vmem>>, vector<1x16x32xf32>
    %115 = vector.shape_cast %114 : vector<1x16x32xf32> to vector<16x32xf32>
    %c6_168 = arith.constant 6 : index
    %c0_169 = arith.constant 0 : index
    %c0_170 = arith.constant 0 : index
    %116 = vector.load %arg3[%c6_168, %c0_169, %c0_170] : memref<8x16x32xf32, #tpu.memory_space<vmem>>, vector<1x16x32xf32>
    %117 = vector.shape_cast %116 : vector<1x16x32xf32> to vector<16x32xf32>
    %c7_171 = arith.constant 7 : index
    %c0_172 = arith.constant 0 : index
    %c0_173 = arith.constant 0 : index
    %118 = vector.load %arg3[%c7_171, %c0_172, %c0_173] : memref<8x16x32xf32, #tpu.memory_space<vmem>>, vector<1x16x32xf32>
    %119 = vector.shape_cast %118 : vector<1x16x32xf32> to vector<16x32xf32>
    %cst_174 = arith.constant 0.000000e+00 : f32
    %120 = vector.broadcast %cst_174 : f32 to vector<16x32xf32>
    %121 = vector.extract_strided_slice %103 {offsets = [0, 0], sizes = [16, 4], strides = [1, 1]} : vector<16x128xf32> to vector<16x4xf32>
    %cst_175 = arith.constant dense<0xFF800000> : vector<16xf32>
    %122 = vector.multi_reduction <maximumf>, %121, %cst_175 [1] : vector<16x4xf32> to vector<16xf32>
    %123 = vector.shape_cast %122 : vector<16xf32> to vector<16x1xf32>
    %124 = vector.broadcast %123 : vector<16x1xf32> to vector<16x32xf32>
    %125 = arith.mulf %124, %105 : vector<16x32xf32>
    %126 = arith.addf %120, %125 : vector<16x32xf32>
    %127 = vector.extract_strided_slice %103 {offsets = [0, 4], sizes = [16, 4], strides = [1, 1]} : vector<16x128xf32> to vector<16x4xf32>
    %cst_176 = arith.constant dense<0xFF800000> : vector<16xf32>
    %128 = vector.multi_reduction <maximumf>, %127, %cst_176 [1] : vector<16x4xf32> to vector<16xf32>
    %129 = vector.shape_cast %128 : vector<16xf32> to vector<16x1xf32>
    %130 = vector.broadcast %129 : vector<16x1xf32> to vector<16x32xf32>
    %131 = arith.mulf %130, %107 : vector<16x32xf32>
    %132 = arith.addf %126, %131 : vector<16x32xf32>
    %133 = vector.extract_strided_slice %103 {offsets = [0, 8], sizes = [16, 4], strides = [1, 1]} : vector<16x128xf32> to vector<16x4xf32>
    %cst_177 = arith.constant dense<0xFF800000> : vector<16xf32>
    %134 = vector.multi_reduction <maximumf>, %133, %cst_177 [1] : vector<16x4xf32> to vector<16xf32>
    %135 = vector.shape_cast %134 : vector<16xf32> to vector<16x1xf32>
    %136 = vector.broadcast %135 : vector<16x1xf32> to vector<16x32xf32>
    %137 = arith.mulf %136, %109 : vector<16x32xf32>
    %138 = arith.addf %132, %137 : vector<16x32xf32>
    %139 = vector.extract_strided_slice %103 {offsets = [0, 12], sizes = [16, 4], strides = [1, 1]} : vector<16x128xf32> to vector<16x4xf32>
    %cst_178 = arith.constant dense<0xFF800000> : vector<16xf32>
    %140 = vector.multi_reduction <maximumf>, %139, %cst_178 [1] : vector<16x4xf32> to vector<16xf32>
    %141 = vector.shape_cast %140 : vector<16xf32> to vector<16x1xf32>
    %142 = vector.broadcast %141 : vector<16x1xf32> to vector<16x32xf32>
    %143 = arith.mulf %142, %111 : vector<16x32xf32>
    %144 = arith.addf %138, %143 : vector<16x32xf32>
    %145 = vector.extract_strided_slice %103 {offsets = [0, 16], sizes = [16, 4], strides = [1, 1]} : vector<16x128xf32> to vector<16x4xf32>
    %cst_179 = arith.constant dense<0xFF800000> : vector<16xf32>
    %146 = vector.multi_reduction <maximumf>, %145, %cst_179 [1] : vector<16x4xf32> to vector<16xf32>
    %147 = vector.shape_cast %146 : vector<16xf32> to vector<16x1xf32>
    %148 = vector.broadcast %147 : vector<16x1xf32> to vector<16x32xf32>
    %149 = arith.mulf %148, %113 : vector<16x32xf32>
    %150 = arith.addf %144, %149 : vector<16x32xf32>
    %151 = vector.extract_strided_slice %103 {offsets = [0, 20], sizes = [16, 4], strides = [1, 1]} : vector<16x128xf32> to vector<16x4xf32>
    %cst_180 = arith.constant dense<0xFF800000> : vector<16xf32>
    %152 = vector.multi_reduction <maximumf>, %151, %cst_180 [1] : vector<16x4xf32> to vector<16xf32>
    %153 = vector.shape_cast %152 : vector<16xf32> to vector<16x1xf32>
    %154 = vector.broadcast %153 : vector<16x1xf32> to vector<16x32xf32>
    %155 = arith.mulf %154, %115 : vector<16x32xf32>
    %156 = arith.addf %150, %155 : vector<16x32xf32>
    %157 = vector.extract_strided_slice %103 {offsets = [0, 24], sizes = [16, 4], strides = [1, 1]} : vector<16x128xf32> to vector<16x4xf32>
    %cst_181 = arith.constant dense<0xFF800000> : vector<16xf32>
    %158 = vector.multi_reduction <maximumf>, %157, %cst_181 [1] : vector<16x4xf32> to vector<16xf32>
    %159 = vector.shape_cast %158 : vector<16xf32> to vector<16x1xf32>
    %160 = vector.broadcast %159 : vector<16x1xf32> to vector<16x32xf32>
    %161 = arith.mulf %160, %117 : vector<16x32xf32>
    %162 = arith.addf %156, %161 : vector<16x32xf32>
    %163 = vector.extract_strided_slice %103 {offsets = [0, 28], sizes = [16, 4], strides = [1, 1]} : vector<16x128xf32> to vector<16x4xf32>
    %cst_182 = arith.constant dense<0xFF800000> : vector<16xf32>
    %164 = vector.multi_reduction <maximumf>, %163, %cst_182 [1] : vector<16x4xf32> to vector<16xf32>
    %165 = vector.shape_cast %164 : vector<16xf32> to vector<16x1xf32>
    %166 = vector.broadcast %165 : vector<16x1xf32> to vector<16x32xf32>
    %167 = arith.mulf %166, %119 : vector<16x32xf32>
    %168 = arith.addf %162, %167 : vector<16x32xf32>
    %cst_183 = arith.constant dense<0.000000e+00> : vector<32xf32>
    %169 = vector.multi_reduction <add>, %168, %cst_183 [0] : vector<16x32xf32> to vector<32xf32>
    %170 = vector.shape_cast %169 : vector<32xf32> to vector<1x32xf32>
    %cst_184 = arith.constant 0.000000e+00 : f32
    %171 = vector.broadcast %cst_184 : f32 to vector<16x32xf32>
    %172 = vector.extract_strided_slice %103 {offsets = [0, 32], sizes = [16, 4], strides = [1, 1]} : vector<16x128xf32> to vector<16x4xf32>
    %cst_185 = arith.constant dense<0xFF800000> : vector<16xf32>
    %173 = vector.multi_reduction <maximumf>, %172, %cst_185 [1] : vector<16x4xf32> to vector<16xf32>
    %174 = vector.shape_cast %173 : vector<16xf32> to vector<16x1xf32>
    %175 = vector.broadcast %174 : vector<16x1xf32> to vector<16x32xf32>
    %176 = arith.mulf %175, %105 : vector<16x32xf32>
    %177 = arith.addf %171, %176 : vector<16x32xf32>
    %178 = vector.extract_strided_slice %103 {offsets = [0, 36], sizes = [16, 4], strides = [1, 1]} : vector<16x128xf32> to vector<16x4xf32>
    %cst_186 = arith.constant dense<0xFF800000> : vector<16xf32>
    %179 = vector.multi_reduction <maximumf>, %178, %cst_186 [1] : vector<16x4xf32> to vector<16xf32>
    %180 = vector.shape_cast %179 : vector<16xf32> to vector<16x1xf32>
    %181 = vector.broadcast %180 : vector<16x1xf32> to vector<16x32xf32>
    %182 = arith.mulf %181, %107 : vector<16x32xf32>
    %183 = arith.addf %177, %182 : vector<16x32xf32>
    %184 = vector.extract_strided_slice %103 {offsets = [0, 40], sizes = [16, 4], strides = [1, 1]} : vector<16x128xf32> to vector<16x4xf32>
    %cst_187 = arith.constant dense<0xFF800000> : vector<16xf32>
    %185 = vector.multi_reduction <maximumf>, %184, %cst_187 [1] : vector<16x4xf32> to vector<16xf32>
    %186 = vector.shape_cast %185 : vector<16xf32> to vector<16x1xf32>
    %187 = vector.broadcast %186 : vector<16x1xf32> to vector<16x32xf32>
    %188 = arith.mulf %187, %109 : vector<16x32xf32>
    %189 = arith.addf %183, %188 : vector<16x32xf32>
    %190 = vector.extract_strided_slice %103 {offsets = [0, 44], sizes = [16, 4], strides = [1, 1]} : vector<16x128xf32> to vector<16x4xf32>
    %cst_188 = arith.constant dense<0xFF800000> : vector<16xf32>
    %191 = vector.multi_reduction <maximumf>, %190, %cst_188 [1] : vector<16x4xf32> to vector<16xf32>
    %192 = vector.shape_cast %191 : vector<16xf32> to vector<16x1xf32>
    %193 = vector.broadcast %192 : vector<16x1xf32> to vector<16x32xf32>
    %194 = arith.mulf %193, %111 : vector<16x32xf32>
    %195 = arith.addf %189, %194 : vector<16x32xf32>
    %196 = vector.extract_strided_slice %103 {offsets = [0, 48], sizes = [16, 4], strides = [1, 1]} : vector<16x128xf32> to vector<16x4xf32>
    %cst_189 = arith.constant dense<0xFF800000> : vector<16xf32>
    %197 = vector.multi_reduction <maximumf>, %196, %cst_189 [1] : vector<16x4xf32> to vector<16xf32>
    %198 = vector.shape_cast %197 : vector<16xf32> to vector<16x1xf32>
    %199 = vector.broadcast %198 : vector<16x1xf32> to vector<16x32xf32>
    %200 = arith.mulf %199, %113 : vector<16x32xf32>
    %201 = arith.addf %195, %200 : vector<16x32xf32>
    %202 = vector.extract_strided_slice %103 {offsets = [0, 52], sizes = [16, 4], strides = [1, 1]} : vector<16x128xf32> to vector<16x4xf32>
    %cst_190 = arith.constant dense<0xFF800000> : vector<16xf32>
    %203 = vector.multi_reduction <maximumf>, %202, %cst_190 [1] : vector<16x4xf32> to vector<16xf32>
    %204 = vector.shape_cast %203 : vector<16xf32> to vector<16x1xf32>
    %205 = vector.broadcast %204 : vector<16x1xf32> to vector<16x32xf32>
    %206 = arith.mulf %205, %115 : vector<16x32xf32>
    %207 = arith.addf %201, %206 : vector<16x32xf32>
    %208 = vector.extract_strided_slice %103 {offsets = [0, 56], sizes = [16, 4], strides = [1, 1]} : vector<16x128xf32> to vector<16x4xf32>
    %cst_191 = arith.constant dense<0xFF800000> : vector<16xf32>
    %209 = vector.multi_reduction <maximumf>, %208, %cst_191 [1] : vector<16x4xf32> to vector<16xf32>
    %210 = vector.shape_cast %209 : vector<16xf32> to vector<16x1xf32>
    %211 = vector.broadcast %210 : vector<16x1xf32> to vector<16x32xf32>
    %212 = arith.mulf %211, %117 : vector<16x32xf32>
    %213 = arith.addf %207, %212 : vector<16x32xf32>
    %214 = vector.extract_strided_slice %103 {offsets = [0, 60], sizes = [16, 4], strides = [1, 1]} : vector<16x128xf32> to vector<16x4xf32>
    %cst_192 = arith.constant dense<0xFF800000> : vector<16xf32>
    %215 = vector.multi_reduction <maximumf>, %214, %cst_192 [1] : vector<16x4xf32> to vector<16xf32>
    %216 = vector.shape_cast %215 : vector<16xf32> to vector<16x1xf32>
    %217 = vector.broadcast %216 : vector<16x1xf32> to vector<16x32xf32>
    %218 = arith.mulf %217, %119 : vector<16x32xf32>
    %219 = arith.addf %213, %218 : vector<16x32xf32>
    %cst_193 = arith.constant dense<0.000000e+00> : vector<32xf32>
    %220 = vector.multi_reduction <add>, %219, %cst_193 [0] : vector<16x32xf32> to vector<32xf32>
    %221 = vector.shape_cast %220 : vector<32xf32> to vector<1x32xf32>
    %cst_194 = arith.constant 0.000000e+00 : f32
    %222 = vector.broadcast %cst_194 : f32 to vector<16x32xf32>
    %223 = vector.extract_strided_slice %103 {offsets = [0, 64], sizes = [16, 4], strides = [1, 1]} : vector<16x128xf32> to vector<16x4xf32>
    %cst_195 = arith.constant dense<0xFF800000> : vector<16xf32>
    %224 = vector.multi_reduction <maximumf>, %223, %cst_195 [1] : vector<16x4xf32> to vector<16xf32>
    %225 = vector.shape_cast %224 : vector<16xf32> to vector<16x1xf32>
    %226 = vector.broadcast %225 : vector<16x1xf32> to vector<16x32xf32>
    %227 = arith.mulf %226, %105 : vector<16x32xf32>
    %228 = arith.addf %222, %227 : vector<16x32xf32>
    %229 = vector.extract_strided_slice %103 {offsets = [0, 68], sizes = [16, 4], strides = [1, 1]} : vector<16x128xf32> to vector<16x4xf32>
    %cst_196 = arith.constant dense<0xFF800000> : vector<16xf32>
    %230 = vector.multi_reduction <maximumf>, %229, %cst_196 [1] : vector<16x4xf32> to vector<16xf32>
    %231 = vector.shape_cast %230 : vector<16xf32> to vector<16x1xf32>
    %232 = vector.broadcast %231 : vector<16x1xf32> to vector<16x32xf32>
    %233 = arith.mulf %232, %107 : vector<16x32xf32>
    %234 = arith.addf %228, %233 : vector<16x32xf32>
    %235 = vector.extract_strided_slice %103 {offsets = [0, 72], sizes = [16, 4], strides = [1, 1]} : vector<16x128xf32> to vector<16x4xf32>
    %cst_197 = arith.constant dense<0xFF800000> : vector<16xf32>
    %236 = vector.multi_reduction <maximumf>, %235, %cst_197 [1] : vector<16x4xf32> to vector<16xf32>
    %237 = vector.shape_cast %236 : vector<16xf32> to vector<16x1xf32>
    %238 = vector.broadcast %237 : vector<16x1xf32> to vector<16x32xf32>
    %239 = arith.mulf %238, %109 : vector<16x32xf32>
    %240 = arith.addf %234, %239 : vector<16x32xf32>
    %241 = vector.extract_strided_slice %103 {offsets = [0, 76], sizes = [16, 4], strides = [1, 1]} : vector<16x128xf32> to vector<16x4xf32>
    %cst_198 = arith.constant dense<0xFF800000> : vector<16xf32>
    %242 = vector.multi_reduction <maximumf>, %241, %cst_198 [1] : vector<16x4xf32> to vector<16xf32>
    %243 = vector.shape_cast %242 : vector<16xf32> to vector<16x1xf32>
    %244 = vector.broadcast %243 : vector<16x1xf32> to vector<16x32xf32>
    %245 = arith.mulf %244, %111 : vector<16x32xf32>
    %246 = arith.addf %240, %245 : vector<16x32xf32>
    %247 = vector.extract_strided_slice %103 {offsets = [0, 80], sizes = [16, 4], strides = [1, 1]} : vector<16x128xf32> to vector<16x4xf32>
    %cst_199 = arith.constant dense<0xFF800000> : vector<16xf32>
    %248 = vector.multi_reduction <maximumf>, %247, %cst_199 [1] : vector<16x4xf32> to vector<16xf32>
    %249 = vector.shape_cast %248 : vector<16xf32> to vector<16x1xf32>
    %250 = vector.broadcast %249 : vector<16x1xf32> to vector<16x32xf32>
    %251 = arith.mulf %250, %113 : vector<16x32xf32>
    %252 = arith.addf %246, %251 : vector<16x32xf32>
    %253 = vector.extract_strided_slice %103 {offsets = [0, 84], sizes = [16, 4], strides = [1, 1]} : vector<16x128xf32> to vector<16x4xf32>
    %cst_200 = arith.constant dense<0xFF800000> : vector<16xf32>
    %254 = vector.multi_reduction <maximumf>, %253, %cst_200 [1] : vector<16x4xf32> to vector<16xf32>
    %255 = vector.shape_cast %254 : vector<16xf32> to vector<16x1xf32>
    %256 = vector.broadcast %255 : vector<16x1xf32> to vector<16x32xf32>
    %257 = arith.mulf %256, %115 : vector<16x32xf32>
    %258 = arith.addf %252, %257 : vector<16x32xf32>
    %259 = vector.extract_strided_slice %103 {offsets = [0, 88], sizes = [16, 4], strides = [1, 1]} : vector<16x128xf32> to vector<16x4xf32>
    %cst_201 = arith.constant dense<0xFF800000> : vector<16xf32>
    %260 = vector.multi_reduction <maximumf>, %259, %cst_201 [1] : vector<16x4xf32> to vector<16xf32>
    %261 = vector.shape_cast %260 : vector<16xf32> to vector<16x1xf32>
    %262 = vector.broadcast %261 : vector<16x1xf32> to vector<16x32xf32>
    %263 = arith.mulf %262, %117 : vector<16x32xf32>
    %264 = arith.addf %258, %263 : vector<16x32xf32>
    %265 = vector.extract_strided_slice %103 {offsets = [0, 92], sizes = [16, 4], strides = [1, 1]} : vector<16x128xf32> to vector<16x4xf32>
    %cst_202 = arith.constant dense<0xFF800000> : vector<16xf32>
    %266 = vector.multi_reduction <maximumf>, %265, %cst_202 [1] : vector<16x4xf32> to vector<16xf32>
    %267 = vector.shape_cast %266 : vector<16xf32> to vector<16x1xf32>
    %268 = vector.broadcast %267 : vector<16x1xf32> to vector<16x32xf32>
    %269 = arith.mulf %268, %119 : vector<16x32xf32>
    %270 = arith.addf %264, %269 : vector<16x32xf32>
    %cst_203 = arith.constant dense<0.000000e+00> : vector<32xf32>
    %271 = vector.multi_reduction <add>, %270, %cst_203 [0] : vector<16x32xf32> to vector<32xf32>
    %272 = vector.shape_cast %271 : vector<32xf32> to vector<1x32xf32>
    %cst_204 = arith.constant 0.000000e+00 : f32
    %273 = vector.broadcast %cst_204 : f32 to vector<16x32xf32>
    %274 = vector.extract_strided_slice %103 {offsets = [0, 96], sizes = [16, 4], strides = [1, 1]} : vector<16x128xf32> to vector<16x4xf32>
    %cst_205 = arith.constant dense<0xFF800000> : vector<16xf32>
    %275 = vector.multi_reduction <maximumf>, %274, %cst_205 [1] : vector<16x4xf32> to vector<16xf32>
    %276 = vector.shape_cast %275 : vector<16xf32> to vector<16x1xf32>
    %277 = vector.broadcast %276 : vector<16x1xf32> to vector<16x32xf32>
    %278 = arith.mulf %277, %105 : vector<16x32xf32>
    %279 = arith.addf %273, %278 : vector<16x32xf32>
    %280 = vector.extract_strided_slice %103 {offsets = [0, 100], sizes = [16, 4], strides = [1, 1]} : vector<16x128xf32> to vector<16x4xf32>
    %cst_206 = arith.constant dense<0xFF800000> : vector<16xf32>
    %281 = vector.multi_reduction <maximumf>, %280, %cst_206 [1] : vector<16x4xf32> to vector<16xf32>
    %282 = vector.shape_cast %281 : vector<16xf32> to vector<16x1xf32>
    %283 = vector.broadcast %282 : vector<16x1xf32> to vector<16x32xf32>
    %284 = arith.mulf %283, %107 : vector<16x32xf32>
    %285 = arith.addf %279, %284 : vector<16x32xf32>
    %286 = vector.extract_strided_slice %103 {offsets = [0, 104], sizes = [16, 4], strides = [1, 1]} : vector<16x128xf32> to vector<16x4xf32>
    %cst_207 = arith.constant dense<0xFF800000> : vector<16xf32>
    %287 = vector.multi_reduction <maximumf>, %286, %cst_207 [1] : vector<16x4xf32> to vector<16xf32>
    %288 = vector.shape_cast %287 : vector<16xf32> to vector<16x1xf32>
    %289 = vector.broadcast %288 : vector<16x1xf32> to vector<16x32xf32>
    %290 = arith.mulf %289, %109 : vector<16x32xf32>
    %291 = arith.addf %285, %290 : vector<16x32xf32>
    %292 = vector.extract_strided_slice %103 {offsets = [0, 108], sizes = [16, 4], strides = [1, 1]} : vector<16x128xf32> to vector<16x4xf32>
    %cst_208 = arith.constant dense<0xFF800000> : vector<16xf32>
    %293 = vector.multi_reduction <maximumf>, %292, %cst_208 [1] : vector<16x4xf32> to vector<16xf32>
    %294 = vector.shape_cast %293 : vector<16xf32> to vector<16x1xf32>
    %295 = vector.broadcast %294 : vector<16x1xf32> to vector<16x32xf32>
    %296 = arith.mulf %295, %111 : vector<16x32xf32>
    %297 = arith.addf %291, %296 : vector<16x32xf32>
    %298 = vector.extract_strided_slice %103 {offsets = [0, 112], sizes = [16, 4], strides = [1, 1]} : vector<16x128xf32> to vector<16x4xf32>
    %cst_209 = arith.constant dense<0xFF800000> : vector<16xf32>
    %299 = vector.multi_reduction <maximumf>, %298, %cst_209 [1] : vector<16x4xf32> to vector<16xf32>
    %300 = vector.shape_cast %299 : vector<16xf32> to vector<16x1xf32>
    %301 = vector.broadcast %300 : vector<16x1xf32> to vector<16x32xf32>
    %302 = arith.mulf %301, %113 : vector<16x32xf32>
    %303 = arith.addf %297, %302 : vector<16x32xf32>
    %304 = vector.extract_strided_slice %103 {offsets = [0, 116], sizes = [16, 4], strides = [1, 1]} : vector<16x128xf32> to vector<16x4xf32>
    %cst_210 = arith.constant dense<0xFF800000> : vector<16xf32>
    %305 = vector.multi_reduction <maximumf>, %304, %cst_210 [1] : vector<16x4xf32> to vector<16xf32>
    %306 = vector.shape_cast %305 : vector<16xf32> to vector<16x1xf32>
    %307 = vector.broadcast %306 : vector<16x1xf32> to vector<16x32xf32>
    %308 = arith.mulf %307, %115 : vector<16x32xf32>
    %309 = arith.addf %303, %308 : vector<16x32xf32>
    %310 = vector.extract_strided_slice %103 {offsets = [0, 120], sizes = [16, 4], strides = [1, 1]} : vector<16x128xf32> to vector<16x4xf32>
    %cst_211 = arith.constant dense<0xFF800000> : vector<16xf32>
    %311 = vector.multi_reduction <maximumf>, %310, %cst_211 [1] : vector<16x4xf32> to vector<16xf32>
    %312 = vector.shape_cast %311 : vector<16xf32> to vector<16x1xf32>
    %313 = vector.broadcast %312 : vector<16x1xf32> to vector<16x32xf32>
    %314 = arith.mulf %313, %117 : vector<16x32xf32>
    %315 = arith.addf %309, %314 : vector<16x32xf32>
    %316 = vector.extract_strided_slice %103 {offsets = [0, 124], sizes = [16, 4], strides = [1, 1]} : vector<16x128xf32> to vector<16x4xf32>
    %cst_212 = arith.constant dense<0xFF800000> : vector<16xf32>
    %317 = vector.multi_reduction <maximumf>, %316, %cst_212 [1] : vector<16x4xf32> to vector<16xf32>
    %318 = vector.shape_cast %317 : vector<16xf32> to vector<16x1xf32>
    %319 = vector.broadcast %318 : vector<16x1xf32> to vector<16x32xf32>
    %320 = arith.mulf %319, %119 : vector<16x32xf32>
    %321 = arith.addf %315, %320 : vector<16x32xf32>
    %cst_213 = arith.constant dense<0.000000e+00> : vector<32xf32>
    %322 = vector.multi_reduction <add>, %321, %cst_213 [0] : vector<16x32xf32> to vector<32xf32>
    %323 = vector.shape_cast %322 : vector<32xf32> to vector<1x32xf32>
    %324 = tpu.concatenate %170, %221, %272, %323 in 0 : vector<1x32xf32>, vector<1x32xf32>, vector<1x32xf32>, vector<1x32xf32> -> vector<4x32xf32>
    %c0_214 = arith.constant 0 : index
    %c0_215 = arith.constant 0 : index
    %325 = vector.load %arg4[%c0_214, %c0_215] : memref<1x32xf32, #tpu.memory_space<vmem>>, vector<1x32xf32>
    %326 = vector.broadcast %325 : vector<1x32xf32> to vector<4x32xf32>
    %327 = arith.addf %324, %326 : vector<4x32xf32>
    %cst_216 = arith.constant 0.000000e+00 : f32
    %328 = vector.broadcast %cst_216 : f32 to vector<4x32xf32>
    %329 = arith.maximumf %327, %328 : vector<4x32xf32>
    %c0_217 = arith.constant 0 : index
    %c0_218 = arith.constant 0 : index
    %330 = vector.load %arg5[%c0_217, %c0_218] : memref<32x16xf32, #tpu.memory_space<vmem>>, vector<32x16xf32>
    %cst_219 = arith.constant dense<0.000000e+00> : vector<4x16xf32>
    %331 = tpu.matmul %329, %330, %cst_219 {dimension_numbers = #tpu.dot_dimension_numbers<[1], [0], [0], [1], [0, 0, 1, 1], [], []>} : vector<4x32xf32>, vector<32x16xf32>, vector<4x16xf32> -> vector<4x16xf32>
    %c0_220 = arith.constant 0 : index
    %c0_221 = arith.constant 0 : index
    %332 = vector.load %arg6[%c0_220, %c0_221] : memref<1x16xf32, #tpu.memory_space<vmem>>, vector<1x16xf32>
    %333 = vector.broadcast %332 : vector<1x16xf32> to vector<4x16xf32>
    %334 = arith.addf %331, %333 : vector<4x16xf32>
    %cst_222 = arith.constant 0.000000e+00 : f32
    %335 = vector.broadcast %cst_222 : f32 to vector<4x16xf32>
    %336 = arith.maximumf %334, %335 : vector<4x16xf32>
    %c0_223 = arith.constant 0 : index
    %c0_224 = arith.constant 0 : index
    %337 = vector.load %arg7[%c0_223, %c0_224] : memref<16x1xf32, #tpu.memory_space<vmem>>, vector<16x1xf32>
    %cst_225 = arith.constant dense<0.000000e+00> : vector<4x1xf32>
    %338 = tpu.matmul %336, %337, %cst_225 {dimension_numbers = #tpu.dot_dimension_numbers<[1], [0], [0], [1], [0, 0, 1, 1], [], []>} : vector<4x16xf32>, vector<16x1xf32>, vector<4x1xf32> -> vector<4x1xf32>
    %c0_226 = arith.constant 0 : index
    %c0_227 = arith.constant 0 : index
    %339 = vector.load %arg8[%c0_226, %c0_227] : memref<1x1xf32, #tpu.memory_space<vmem>>, vector<1x1xf32>
    %340 = vector.broadcast %339 : vector<1x1xf32> to vector<4x1xf32>
    %341 = arith.addf %338, %340 : vector<4x1xf32>
    %cst_228 = arith.constant 0.000000e+00 : f32
    %342 = vector.broadcast %cst_228 : f32 to vector<4x1xf32>
    %343 = arith.subf %342, %341 : vector<4x1xf32>
    %344 = math.exp %343 : vector<4x1xf32>
    %cst_229 = arith.constant 1.000000e+00 : f32
    %345 = vector.broadcast %cst_229 : f32 to vector<4x1xf32>
    %346 = arith.addf %345, %344 : vector<4x1xf32>
    %cst_230 = arith.constant 1.000000e+00 : f32
    %347 = vector.broadcast %cst_230 : f32 to vector<4x1xf32>
    %348 = arith.divf %347, %346 : vector<4x1xf32>
    %c0_231 = arith.constant 0 : index
    %c0_232 = arith.constant 0 : index
    %349 = vector.load %arg9[%c0_231, %c0_232] : memref<4x1xf32, #tpu.memory_space<vmem>>, vector<4x1xf32>
    tpu.vector_store %arg9[%c0_231, %c0_232], %348 {strides = array<i32>} : memref<4x1xf32, #tpu.memory_space<vmem>>, vector<4x1xf32>,
    return
  }
}

</mosaic_0001>

<bundles_post_ra>
// kernel: simple_cnn_forward.1
= control target key start
LH: loop header
LB: loop body
LE: loop exit
PB: predicated region body
PF: predicated region fallthrough
CT: control target
= control target key end

     0   :  { %s1595_s0 = inlined_call_operand.vmem [shape: f32[4,4,40], index: 0, kind: input, shape index: {}]   ;;  %s1596_s1 = inlined_call_operand.vmem [shape: f32[16,32], index: 1, kind: input, shape index: {}]   ;;  %s1597_s2 = inlined_call_operand.vmem [shape: f32[16,1], index: 2, kind: input, shape index: {}]   ;;  %s1598_s3 = inlined_call_operand.hbm [shape: f32[8,16,32], index: 3, kind: input, shape index: {}]   ;;  %s1599_s4 = inlined_call_operand.vmem [shape: f32[1,32], index: 4, kind: input, shape index: {}]   ;;  %s1600_s5 = inlined_call_operand.vmem [shape: f32[32,16], index: 5, kind: input, shape index: {}]   ;;  %s1601_s6 = inlined_call_operand.vmem [shape: f32[1,16], index: 6, kind: input, shape index: {}]   ;;  %s1602_s7 = inlined_call_operand.vmem [shape: f32[16,1], index: 7, kind: input, shape index: {}]   ;;  %s1603_s8 = inlined_call_operand.<no memory space> [shape: f32[1,1], index: 8, kind: input, shape index: {}]   ;;  %s1604_s9 = inlined_call_operand.vmem [shape: f32[4,1], index: 9, kind: output, shape index: {}]  }
   0x1   :  { %v14_v0 = vstv %s1603_s8 }
   0x2   :  { %15 = vst [vmem:[#allocation3] sm:$0x1] %v14_v0 }
   0x3   :  { %16 = vsyncpa [#allocation5], 0  ;;  %s1111_s11 = smov [#allocation4]   ;;  %s1087_s15 = scalar_lea.hbm %s1598_s3, 2048 }
   0x4   :  { %s28_s12 = sshll.u32 %s1111_s11, 4  ;;  %p1088_p0 = scmp.ne.s32.totalorder %s1598_s3, %s1087_s15  ;;  %s29_s12 = int_to_ptr.vmem [resolvable:$true] %s28_s12 }
   0x5   :  { %p1091_p1 = scmp.lt.u32.totalorder %s1087_s15, %s1598_s3 }
   0x7   :  { %p1093_p2 = pnand %p1091_p1, %p1088_p0 }
   0x9   :  { %1096 = shalt.err (!%p1093_p2)
}
   0xa   :  { %s1097_s8 = scalar_lea.vmem %s29_s12, 2048  ;;  %p1102_p4 = scmp.lt.s32.totalorder %s29_s12, %s29_s12 }
   0xb   :  { %p1098_p3 = scmp.ne.s32.totalorder %s29_s12, %s1097_s8  ;;  %p1103_p5 = scmp.lt.s32.totalorder %s1097_s8, %s1097_s8 }
   0xd   :  { %p1104_p6 = por %p1103_p5, %p1102_p4 }
   0xf   :  { %p1105_p7 = pnand %p1104_p6, %p1098_p3 }
  0x11   :  { %1108 = shalt.err (!%p1105_p7)
}
  0x12   :  { %s1112_s20 = smov 128   ;;  %s1113_s21 = smov 8  }
  0x13   :  { %34 = dma.hbm_to_vmem [thread:$0]  %s1598_s3, 2048, %s29_s12, [#allocation5], %s1112_s20, %s1112_s20, %s1113_s21  }
  0x14   :  { %1109 = dma.done.wait [#allocation5], 2048  }
  0x15   :  { %1110 = vsyncadd [#allocation5], 4294965248  ;;  %v51_v1 = vld [vmem:[%s1595_s0] sm:$0xf]  ;;  %s1114_s28 = smov 127   ;;  %s1115_s29 = smov 125  }
  0x16   :  { %v63_v2 = vld [vmem:[%s1595_s0] sm:$0xf]  ;;  %53 = vrot.lane.b32.xlu0 %v51_v1, %s1114_s28  ;;  %v952_v4 = vld [vmem:[%s1595_s0 + $0x4] sm:$0xf]  ;;  %s1116_s12 = smov 126   ;;  %s1117_s13 = smov 32  }
  0x17   :  { %65 = vrot.lane.b32.xlu1 %v63_v2, %s1115_s29  ;;  %v57_v3 = vld [vmem:[%s1595_s0] sm:$0xf]  ;;  %v953_v5 = vld [vmem:[%s1595_s0 + $0x4] sm:$0xf]  ;;  %s1118_s18 = smov 31   ;;  %s1119_s19 = smov 30  }
  0x18   :  { %v954_v6 = vld [vmem:[%s1595_s0 + $0x4] sm:$0xf]  ;;  %v960_v8 = vld [vmem:[%s1595_s0 + $0x8] sm:$0xf]  ;;  %s1120_s23 = smov 29   ;;  %s1121_s24 = smov 64  }
  0x19   :  { %v955_v7 = vld [vmem:[%s1595_s0 + $0x4] sm:$0xf]  ;;  %vm49_vm0 = vcmask 257024   ;;  %v48_v9 = vld [vmem:[%s1595_s0] sm:$0xf]  ;;  %s1122_s10 = smov 63  }
  0x1a   :  { %59 = vrot.lane.b32.xlu0 %v57_v3, %s1116_s12  ;;  %v961_v10 = vld [vmem:[%s1595_s0 + $0x8] sm:$0xf]  ;;  %50 = vst.msk [vmem:[#allocation2] sm:$0xf] %vm49_vm0, %v48_v9  ;;  %s1123_s11 = smov 62   ;;  %s1124_s15 = smov 61  }
  0x1b   :  { %96 = vrot.lane.b32.xlu1 %v952_v4, %s1117_s13  ;;  %v962_v11 = vld [vmem:[%s1595_s0 + $0x8] sm:$0xf]  ;;  %v968_v13 = vld [vmem:[%s1595_s0 + $0xc] sm:$0xf]  ;;  %s1125_s16 = smov 96   ;;  %s1126_s20 = smov 95  }
  0x1c   :  { %v963_v12 = vld [vmem:[%s1595_s0 + $0x8] sm:$0xf]  ;;  %v969_v14 = vld [vmem:[%s1595_s0 + $0xc] sm:$0xf]  ;;  %s1127_s21 = smov 94   ;;  %s1128_s26 = smov 93  }
  0x1d   :  { %v970_v15 = vld [vmem:[%s1595_s0 + $0xc] sm:$0xf]  ;;  %v69_v17 = vld [vmem:[%s1595_s0] sm:$0xf]  ;;  %s1129_s27 = smov 124   ;;  %s1131_s3 = smov 122  }
  0x1e   :  { %103 = vrot.lane.b32.xlu0 %v953_v5, %s1118_s18  ;;  %v971_v16 = vld [vmem:[%s1595_s0 + $0xc] sm:$0xf]  ;;  %v75_v18 = vld [vmem:[%s1595_s0] sm:$0xf]  ;;  %v956_v21 = vld [vmem:[%s1595_s0 + $0x4] sm:$0xf] }
  0x1f   :  { %109 = vrot.lane.b32.xlu1 %v954_v6, %s1119_s19  ;;  %v81_v19 = vld [vmem:[%s1595_s0] sm:$0xf]  ;;  %s1133_s17 = smov 28   ;;  %v957_v22 = vld [vmem:[%s1595_s0 + $0x4] sm:$0xf]  ;;  %s1135_s22 = smov 26  }
  0x20   :  { %v87_v20 = vld [vmem:[%s1595_s0] sm:$0xf]  ;;  %v958_v23 = vld [vmem:[%s1595_s0 + $0x4] sm:$0xf]  ;;  %v964_v25 = vld [vmem:[%s1595_s0 + $0x8] sm:$0xf] }
  0x21   :  { %v959_v24 = vld [vmem:[%s1595_s0 + $0x4] sm:$0xf]  ;;  %s1137_s28 = smov 60   ;;  %v965_v26 = vld [vmem:[%s1595_s0 + $0x8] sm:$0xf]  ;;  %s1139_s12 = smov 58  }
  0x22   :  { %115 = vrot.lane.b32.xlu0 %v955_v7, %s1120_s23  ;;  %v966_v27 = vld [vmem:[%s1595_s0 + $0x8] sm:$0xf]  ;;  %v972_v29 = vld [vmem:[%s1595_s0 + $0xc] sm:$0xf]  ;;  %s1141_s18 = smov 92   ;;  %s1143_s23 = smov 90  }
  0x23   :  { %146 = vrot.lane.b32.xlu1 %v960_v8, %s1121_s24  ;;  %v967_v28 = vld [vmem:[%s1595_s0 + $0x8] sm:$0xf]  ;;  %v973_v30 = vld [vmem:[%s1595_s0 + $0xc] sm:$0xf]  ;;  %v243_v33 = vld [vmem:[%s1596_s1] sm:$0xff]  ;;  %vm261_vm1 = vcmask 261120  }
  0x24   :  { %v974_v31 = vld [vmem:[%s1595_s0 + $0xc] sm:$0xf]  ;;  %1005 = vmatprep.mubr.msk.f32.mxu0 %vm261_vm1, %v243_v33  ;;  %v249_v35 = vld [vmem:[%s1597_s2] sm:$0xff]  ;;  %v1145_v36 = vmov 0   ;;  %vm99_vm2 = vcmask 519424   ;;  %vm149_vm3 = vcmask 781824  }
  0x25   :  { %v975_v32 = vld [vmem:[%s1595_s0 + $0xc] sm:$0xf]  ;;  %1082 = vset.pattern.permute.xlu0 %v1145_v36  ;;  %1081 = vset.pattern.permute.xlu1 %v1145_v36  ;;  %vm199_vm4 = vcmask 1044224   ;;  %vm368_vm5 = vcmask 31744   ;;  %vm379_vm6 = vcmask 64544   ;;  %vm465_vm7 = vcmask 294144  }
  0x26   :  { %153 = vrot.lane.b32.xlu0 %v961_v10, %s1122_s10  ;;  %v250_v34 = vld [vmem:[%s1597_s2 + $0x8] sm:$0xff]  ;;  %vm476_vm8 = vcmask 326944   ;;  %vm562_vm9 = vcmask 556544   ;;  %vm573_vm10 = vcmask 589344   ;;  %vm390_vm11 = vcmask 97344  }
  0x27   :  { %159 = vrot.lane.b32.xlu1 %v962_v11, %s1123_s11  ;;  %s1130_s11 = smov 123   ;;  %v244_v10 = vld [vmem:[%s1596_s1 + $0x8] sm:$0xff]  ;;  %vm487_vm12 = vcmask 359744   ;;  %vm659_vm13 = vcmask 818944   ;;  %vm670_vm14 = vcmask 851744   ;;  %vm584_vm15 = vcmask 622144  }
  0x2a   :  { %165 = vrot.lane.b32.xlu0 %v963_v12, %s1124_s15 }
  0x2b   :  { %196 = vrot.lane.b32.xlu1 %v968_v13, %s1125_s16  ;;  %s1132_s16 = smov 121  }
  0x2e   :  { %203 = vrot.lane.b32.xlu0 %v969_v14, %s1126_s20 }
  0x2f   :  { %209 = vrot.lane.b32.xlu1 %v970_v15, %s1127_s21  ;;  %s1134_s21 = smov 27  }
  0x32   :  { %215 = vrot.lane.b32.xlu0 %v971_v16, %s1128_s26 }
  0x33   :  { %71 = vrot.lane.b32.xlu1 %v69_v17, %s1129_s27  ;;  %s1136_s27 = smov 25  }
  0x36   :  { %77 = vrot.lane.b32.xlu0 %v75_v18, %s1130_s11 }
  0x37   :  { %83 = vrot.lane.b32.xlu1 %v81_v19, %s1131_s3  ;;  %s1138_s3 = smov 59  }
  0x3a   :  { %89 = vrot.lane.b32.xlu0 %v87_v20, %s1132_s16 }
  0x3b   :  { %121 = vrot.lane.b32.xlu1 %v956_v21, %s1133_s17  ;;  %s1140_s17 = smov 57  }
  0x3e   :  { %127 = vrot.lane.b32.xlu0 %v957_v22, %s1134_s21 }
  0x3f   :  { %133 = vrot.lane.b32.xlu1 %v958_v23, %s1135_s22  ;;  %s1142_s22 = smov 91  }
  0x42   :  { %139 = vrot.lane.b32.xlu0 %v959_v24, %s1136_s27 }
  0x43   :  { %171 = vrot.lane.b32.xlu1 %v964_v25, %s1137_s28  ;;  %s1144_s28 = smov 89  }
  0x46   :  { %177 = vrot.lane.b32.xlu0 %v965_v26, %s1138_s3 }
  0x47   :  { %183 = vrot.lane.b32.xlu1 %v966_v27, %s1139_s12 }
  0x4a   :  { %189 = vrot.lane.b32.xlu0 %v967_v28, %s1140_s17 }
  0x4b   :  { %221 = vrot.lane.b32.xlu1 %v972_v29, %s1141_s18 }
  0x4e   :  { %227 = vrot.lane.b32.xlu0 %v973_v30, %s1142_s22 }
  0x4f   :  { %233 = vrot.lane.b32.xlu1 %v974_v31, %s1143_s23 }
  0x52   :  { %239 = vrot.lane.b32.xlu0 %v975_v32, %s1144_s28 }
  0x53   :  { %253 = vperm.xlu1 %1081, %v249_v35  }
  0x56   :  { %258 = vperm.xlu0 %1082, %v250_v34  }
  0x88   :  { %v54_v37 = vpop.permute.xlu0 %53 }
  0x89   :  { %v66_v38 = vpop.permute.xlu1 %65  ;;  %56 = vst.msk [vmem:[#allocation2 + $0x4] sm:$0xf] %vm49_vm0, %v54_v37 }
  0x8a   :  { %68 = vst.msk [vmem:[#allocation2 + $0xc] sm:$0xf] %vm49_vm0, %v66_v38 }
  0x8c   :  { %v60_v39 = vpop.permute.xlu0 %59 }
  0x8d   :  { %v97_v40 = vpop.permute.xlu1 %96  ;;  %62 = vst.msk [vmem:[#allocation2 + $0x8] sm:$0xf] %vm49_vm0, %v60_v39 }
  0x8e   :  { %100 = vst.msk [vmem:[#allocation2] sm:$0xf] %vm99_vm2, %v97_v40 }
  0x90   :  { %v104_v41 = vpop.permute.xlu0 %103 }
  0x91   :  { %v110_v42 = vpop.permute.xlu1 %109  ;;  %106 = vst.msk [vmem:[#allocation2 + $0x4] sm:$0xf] %vm99_vm2, %v104_v41 }
  0x92   :  { %112 = vst.msk [vmem:[#allocation2 + $0x8] sm:$0xf] %vm99_vm2, %v110_v42 }
  0x94   :  { %v116_v43 = vpop.permute.xlu0 %115 }
  0x95   :  { %v147_v44 = vpop.permute.xlu1 %146  ;;  %118 = vst.msk [vmem:[#allocation2 + $0xc] sm:$0xf] %vm99_vm2, %v116_v43 }
  0x96   :  { %150 = vst.msk [vmem:[#allocation2] sm:$0xf] %vm149_vm3, %v147_v44 }
  0x98   :  { %v154_v45 = vpop.permute.xlu0 %153 }
  0x99   :  { %v160_v46 = vpop.permute.xlu1 %159  ;;  %156 = vst.msk [vmem:[#allocation2 + $0x4] sm:$0xf] %vm149_vm3, %v154_v45 }
  0x9a   :  { %162 = vst.msk [vmem:[#allocation2 + $0x8] sm:$0xf] %vm149_vm3, %v160_v46 }
  0x9c   :  { %v166_v47 = vpop.permute.xlu0 %165 }
  0x9d   :  { %v197_v48 = vpop.permute.xlu1 %196  ;;  %168 = vst.msk [vmem:[#allocation2 + $0xc] sm:$0xf] %vm149_vm3, %v166_v47 }
  0x9e   :  { %200 = vst.msk [vmem:[#allocation2] sm:$0xf] %vm199_vm4, %v197_v48 }
  0xa0   :  { %v204_v49 = vpop.permute.xlu0 %203 }
  0xa1   :  { %v210_v50 = vpop.permute.xlu1 %209  ;;  %206 = vst.msk [vmem:[#allocation2 + $0x4] sm:$0xf] %vm199_vm4, %v204_v49 }
  0xa2   :  { %212 = vst.msk [vmem:[#allocation2 + $0x8] sm:$0xf] %vm199_vm4, %v210_v50 }
  0xa4   :  { %v216_v51 = vpop.permute.xlu0 %215 }
  0xa5   :  { %v72_v52 = vpop.permute.xlu1 %71  ;;  %218 = vst.msk [vmem:[#allocation2 + $0xc] sm:$0xf] %vm199_vm4, %v216_v51 }
  0xa6   :  { %74 = vst.msk [vmem:[#allocation2 + $0x10] sm:$0xf] %vm49_vm0, %v72_v52 }
  0xa8   :  { %v78_v53 = vpop.permute.xlu0 %77  ;;  %v245_v56 = vld [vmem:[#allocation2] sm:$0xff] }
  0xa9   :  { %v84_v54 = vpop.permute.xlu1 %83  ;;  %80 = vst.msk [vmem:[#allocation2 + $0x14] sm:$0xf] %vm49_vm0, %v78_v53 }
  0xaa   :  { %86 = vst.msk [vmem:[#allocation2 + $0x18] sm:$0xf] %vm49_vm0, %v84_v54 }
  0xac   :  { %v90_v55 = vpop.permute.xlu0 %89  ;;  %v246_v57 = vld [vmem:[#allocation2 + $0x8] sm:$0xff] }
  0xad   :  { %v122_v58 = vpop.permute.xlu1 %121  ;;  %92 = vst.msk [vmem:[#allocation2 + $0x1c] sm:$0xf] %vm49_vm0, %v90_v55  ;;  %v1026_v59 = vpack.c.bf16 %v246_v57, %v245_v56  ;;  %vm401_vm0 = vcmask 130144  }
  0xae   :  { %124 = vst.msk [vmem:[#allocation2 + $0x10] sm:$0xf] %vm99_vm2, %v122_v58 }
  0xaf   :  { %1027 = vmatprep.subr.bf16.mxu0 %v1026_v59 }
  0xb0   :  { %v128_v60 = vpop.permute.xlu0 %127  ;;  %1029 = vmatpush3.bf16.msra.mxu0 %v1026_v59 }
  0xb1   :  { %v134_v61 = vpop.permute.xlu1 %133  ;;  %130 = vst.msk [vmem:[#allocation2 + $0x14] sm:$0xf] %vm99_vm2, %v128_v60 }
  0xb2   :  { %136 = vst.msk [vmem:[#allocation2 + $0x18] sm:$0xf] %vm99_vm2, %v134_v61 }
  0xb4   :  { %v140_v62 = vpop.permute.xlu0 %139 }
  0xb5   :  { %v172_v63 = vpop.permute.xlu1 %171  ;;  %142 = vst.msk [vmem:[#allocation2 + $0x1c] sm:$0xf] %vm99_vm2, %v140_v62  ;;  %vm498_vm2 = vcmask 392544  }
  0xb6   :  { %174 = vst.msk [vmem:[#allocation2 + $0x10] sm:$0xf] %vm149_vm3, %v172_v63 }
  0xb8   :  { %v178_v0 = vpop.permute.xlu0 %177 }
  0xb9   :  { %v184_v1 = vpop.permute.xlu1 %183  ;;  %180 = vst.msk [vmem:[#allocation2 + $0x14] sm:$0xf] %vm149_vm3, %v178_v0 }
  0xba   :  { %186 = vst.msk [vmem:[#allocation2 + $0x18] sm:$0xf] %vm149_vm3, %v184_v1 }
  0xbc   :  { %v190_v2 = vpop.permute.xlu0 %189 }
  0xbd   :  { %v222_v3 = vpop.permute.xlu1 %221  ;;  %192 = vst.msk [vmem:[#allocation2 + $0x1c] sm:$0xf] %vm149_vm3, %v190_v2  ;;  %vm681_vm3 = vcmask 884544  }
  0xbe   :  { %224 = vst.msk [vmem:[#allocation2 + $0x10] sm:$0xf] %vm199_vm4, %v222_v3 }
  0xc0   :  { %v228_v4 = vpop.permute.xlu0 %227 }
  0xc1   :  { %v234_v5 = vpop.permute.xlu1 %233  ;;  %230 = vst.msk [vmem:[#allocation2 + $0x14] sm:$0xf] %vm199_vm4, %v228_v4 }
  0xc2   :  { %236 = vst.msk [vmem:[#allocation2 + $0x18] sm:$0xf] %vm199_vm4, %v234_v5 }
  0xc4   :  { %v240_v6 = vpop.permute.xlu0 %239 }
  0xc5   :  { %242 = vst.msk [vmem:[#allocation2 + $0x1c] sm:$0xf] %vm199_vm4, %v240_v6  ;;  %vm595_vm4 = vcmask 654944  }
  0xc8   :  { %v247_v7 = vld [vmem:[#allocation2 + $0x10] sm:$0xff] }
  0xcc   :  { %v248_v8 = vld [vmem:[#allocation2 + $0x18] sm:$0xff] }
  0xcd   :  { %v1030_v9 = vpack.c.bf16 %v248_v8, %v247_v7 }
  0xcf   :  { %1031 = vmatprep.subr.bf16.mxu0 %v1030_v9 }
  0xd0   :  { %1033 = vmatpush3.bf16.msra.mxu0 %v1030_v9 }
  0xd2   :  { %v254_v12 = vpop.permute.xlu1 %253 }
  0xd3   :  { %1006 = vmatmul.mubr.msk.f32.vlgmr.msra.gmra.mrb[0].mxu0 %vm261_vm1, %v244_v10 }
  0xd5   :  { %v259_v11 = vpop.permute.xlu0 %258 }
 0x1a6   :  { %v1007_v13 = vpop.f32.mrb[0].mxu0 }
 0x1a7   :  { %v340_v14 = vadd.f32 %v1007_v13, %v259_v11  ;;  %v334_v15 = vpop.f32.mrb[1].mxu0 }
 0x1a8   :  { %v335_v16 = vadd.f32 %v334_v15, %v254_v12 }
 0x1a9   :  { %v1356_v17 = vmax.f32 %v340_v14, 0.0 }
 0x1aa   :  { %v1358_v18 = vmax.f32 %v335_v16, 0.0 }
 0x1ab   :  { %v372_v19 = vsel %vm368_vm5, %v1356_v17, -inf  ;;  %v383_v21 = vsel %vm379_vm6, %v1356_v17, -inf  ;;  %v469_v23 = vsel %vm465_vm7, %v1356_v17, -inf  ;;  %v480_v25 = vsel %vm476_vm8, %v1356_v17, -inf }
 0x1ac   :  { %373 = vmax.xlane.f32.xlu0 %v372_v19  ;;  %v369_v20 = vsel %vm368_vm5, %v1358_v18, -inf  ;;  %v380_v22 = vsel %vm379_vm6, %v1358_v18, -inf  ;;  %v466_v24 = vsel %vm465_vm7, %v1358_v18, -inf  ;;  %v477_v26 = vsel %vm476_vm8, %v1358_v18, -inf }
 0x1ad   :  { %370 = vmax.xlane.f32.xlu1 %v369_v20  ;;  %v566_v27 = vsel %vm562_vm9, %v1356_v17, -inf  ;;  %v563_v28 = vsel %vm562_vm9, %v1358_v18, -inf  ;;  %v577_v29 = vsel %vm573_vm10, %v1356_v17, -inf  ;;  %v574_v30 = vsel %vm573_vm10, %v1358_v18, -inf }
 0x1ae   :  { %v394_v31 = vsel %vm390_vm11, %v1356_v17, -inf  ;;  %v391_v32 = vsel %vm390_vm11, %v1358_v18, -inf  ;;  %v491_v33 = vsel %vm487_vm12, %v1356_v17, -inf  ;;  %v488_v34 = vsel %vm487_vm12, %v1358_v18, -inf }
 0x1af   :  { %v663_v35 = vsel %vm659_vm13, %v1356_v17, -inf  ;;  %v660_v36 = vsel %vm659_vm13, %v1358_v18, -inf  ;;  %v674_v37 = vsel %vm670_vm14, %v1356_v17, -inf  ;;  %v671_v38 = vsel %vm670_vm14, %v1358_v18, -inf }
 0x1b0   :  { %384 = vmax.xlane.f32.xlu0 %v383_v21  ;;  %v588_v39 = vsel %vm584_vm15, %v1356_v17, -inf  ;;  %v585_v40 = vsel %vm584_vm15, %v1358_v18, -inf  ;;  %v405_v41 = vsel %vm401_vm0, %v1356_v17, -inf  ;;  %v402_v42 = vsel %vm401_vm0, %v1358_v18, -inf }
 0x1b1   :  { %381 = vmax.xlane.f32.xlu1 %v380_v22  ;;  %v502_v43 = vsel %vm498_vm2, %v1356_v17, -inf  ;;  %v499_v44 = vsel %vm498_vm2, %v1358_v18, -inf  ;;  %v685_v45 = vsel %vm681_vm3, %v1356_v17, -inf  ;;  %v682_v46 = vsel %vm681_vm3, %v1358_v18, -inf }
 0x1b2   :  { %v599_v47 = vsel %vm595_vm4, %v1356_v17, -inf  ;;  %v596_v48 = vsel %vm595_vm4, %v1358_v18, -inf  ;;  %vm412_vm5 = vcmask 162944   ;;  %vm509_vm6 = vcmask 425344  }
 0x1b3   :  { %v416_v49 = vsel %vm412_vm5, %v1356_v17, -inf  ;;  %v413_v50 = vsel %vm412_vm5, %v1358_v18, -inf  ;;  %v513_v51 = vsel %vm509_vm6, %v1356_v17, -inf  ;;  %v510_v52 = vsel %vm509_vm6, %v1358_v18, -inf }
 0x1b4   :  { %470 = vmax.xlane.f32.xlu0 %v469_v23  ;;  %vm692_vm7 = vcmask 917344   ;;  %vm606_vm8 = vcmask 687744   ;;  %vm423_vm9 = vcmask 195744   ;;  %vm520_vm10 = vcmask 458144   ;;  %v1424_v23 = vld [vmem:[#allocation4 + $0x8] sm:$0xff] }
 0x1b5   :  { %467 = vmax.xlane.f32.xlu1 %v466_v24  ;;  %v696_v53 = vsel %vm692_vm7, %v1356_v17, -inf  ;;  %v693_v54 = vsel %vm692_vm7, %v1358_v18, -inf  ;;  %v610_v55 = vsel %vm606_vm8, %v1356_v17, -inf  ;;  %v607_v56 = vsel %vm606_vm8, %v1358_v18, -inf  ;;  %v1426_v24 = vld [vmem:[#allocation4 + $0x18] sm:$0xff] }
 0x1b6   :  { %v427_v57 = vsel %vm423_vm9, %v1356_v17, -inf  ;;  %v424_v58 = vsel %vm423_vm9, %v1358_v18, -inf  ;;  %v524_v59 = vsel %vm520_vm10, %v1356_v17, -inf  ;;  %v521_v60 = vsel %vm520_vm10, %v1358_v18, -inf }
 0x1b7   :  { %vm703_vm11 = vcmask 950144   ;;  %vm617_vm12 = vcmask 720544   ;;  %vm434_vm13 = vcmask 228544   ;;  %vm531_vm14 = vcmask 490944  }
 0x1b8   :  { %481 = vmax.xlane.f32.xlu0 %v480_v25  ;;  %v707_v61 = vsel %vm703_vm11, %v1356_v17, -inf  ;;  %v704_v62 = vsel %vm703_vm11, %v1358_v18, -inf  ;;  %v621_v63 = vsel %vm617_vm12, %v1356_v17, -inf  ;;  %v618_v0 = vsel %vm617_vm12, %v1358_v18, -inf  ;;  %v1428_v25 = vld [vmem:[#allocation4] sm:$0xff] }
 0x1b9   :  { %478 = vmax.xlane.f32.xlu1 %v477_v26  ;;  %v438_v1 = vsel %vm434_vm13, %v1356_v17, -inf  ;;  %v435_v2 = vsel %vm434_vm13, %v1358_v18, -inf  ;;  %v535_v3 = vsel %vm531_vm14, %v1356_v17, -inf  ;;  %v532_v4 = vsel %vm531_vm14, %v1358_v18, -inf  ;;  %v1430_v26 = vld [vmem:[#allocation4 + $0x10] sm:$0xff] }
 0x1ba   :  { %vm714_vm15 = vcmask 982944   ;;  %vm628_vm0 = vcmask 753344   ;;  %vm445_vm2 = vcmask 261344   ;;  %vm542_vm3 = vcmask 523744  }
 0x1bb   :  { %v718_v5 = vsel %vm714_vm15, %v1356_v17, -inf  ;;  %v715_v6 = vsel %vm714_vm15, %v1358_v18, -inf  ;;  %v632_v7 = vsel %vm628_vm0, %v1356_v17, -inf  ;;  %v629_v8 = vsel %vm628_vm0, %v1358_v18, -inf }
 0x1bc   :  { %567 = vmax.xlane.f32.xlu0 %v566_v27  ;;  %v449_v9 = vsel %vm445_vm2, %v1356_v17, -inf  ;;  %v446_v10 = vsel %vm445_vm2, %v1358_v18, -inf  ;;  %v546_v11 = vsel %vm542_vm3, %v1356_v17, -inf  ;;  %v543_v12 = vsel %vm542_vm3, %v1358_v18, -inf }
 0x1bd   :  { %564 = vmax.xlane.f32.xlu1 %v563_v28  ;;  %vm725_vm4 = vcmask 1015744   ;;  %vm639_vm5 = vcmask 786144   ;;  %vm736_vm6 = vcmask 1048544   ;;  %vm1147_vm7 = vmmov 0  }
 0x1be   :  { %v729_v13 = vsel %vm725_vm4, %v1356_v17, -inf  ;;  %v726_v14 = vsel %vm725_vm4, %v1358_v18, -inf  ;;  %v643_v15 = vsel %vm639_vm5, %v1356_v17, -inf  ;;  %v640_v16 = vsel %vm639_vm5, %v1358_v18, -inf }
 0x1bf   :  { %v740_v19 = vsel %vm736_vm6, %v1356_v17, -inf  ;;  %v737_v20 = vsel %vm736_vm6, %v1358_v18, -inf  ;;  %vm756_vm8 = vcmask 1040384   ;;  %vm758_vm9 = vcmask 1041408  }
 0x1c0   :  { %578 = vmax.xlane.f32.xlu0 %v577_v29  ;;  %vm760_vm10 = vcmask 1042432   ;;  %vm865_vm11 = vcmask 130048  }
 0x1c1   :  { %575 = vmax.xlane.f32.xlu1 %v574_v30 }
 0x1c4   :  { %395 = vmax.xlane.f32.xlu0 %v394_v31 }
 0x1c5   :  { %392 = vmax.xlane.f32.xlu1 %v391_v32 }
 0x1c8   :  { %492 = vmax.xlane.f32.xlu0 %v491_v33 }
 0x1c9   :  { %489 = vmax.xlane.f32.xlu1 %v488_v34 }
 0x1cc   :  { %664 = vmax.xlane.f32.xlu0 %v663_v35 }
 0x1cd   :  { %661 = vmax.xlane.f32.xlu1 %v660_v36 }
 0x1d0   :  { %675 = vmax.xlane.f32.xlu0 %v674_v37 }
 0x1d1   :  { %672 = vmax.xlane.f32.xlu1 %v671_v38 }
 0x1d4   :  { %589 = vmax.xlane.f32.xlu0 %v588_v39 }
 0x1d5   :  { %586 = vmax.xlane.f32.xlu1 %v585_v40 }
 0x1d8   :  { %406 = vmax.xlane.f32.xlu0 %v405_v41 }
 0x1d9   :  { %403 = vmax.xlane.f32.xlu1 %v402_v42  ;;  %v771_v42 = vld [vmem:[%s1600_s5] sm:$0xff] }
 0x1dc   :  { %503 = vmax.xlane.f32.xlu0 %v502_v43  ;;  %v772_v43 = vld [vmem:[%s1600_s5 + $0x8] sm:$0xff] }
 0x1dd   :  { %500 = vmax.xlane.f32.xlu1 %v499_v44  ;;  %v773_v44 = vld [vmem:[%s1600_s5 + $0x10] sm:$0xff] }
 0x1e0   :  { %686 = vmax.xlane.f32.xlu0 %v685_v45 }
 0x1e1   :  { %683 = vmax.xlane.f32.xlu1 %v682_v46 }
 0x1e4   :  { %600 = vmax.xlane.f32.xlu0 %v599_v47  ;;  %v1146_v47 = vmov 0.0|0.0  }
 0x1e5   :  { %597 = vmax.xlane.f32.xlu1 %v596_v48  ;;  %1034 = vmatprep.subr.bf16.mxu1 %v1146_v47  ;;  %v1035_v48 = vpack.c.bf16 %v772_v43, %v771_v42 }
 0x1e6   :  { %1040 = vmatprep.subr.bf16.mxu0 %v1146_v47 }
 0x1e7   :  { %1036 = vmatpush3.bf16.msra.mxu1 %v1035_v48 }
 0x1e8   :  { %417 = vmax.xlane.f32.xlu0 %v416_v49  ;;  %v774_v49 = vld [vmem:[%s1600_s5 + $0x18] sm:$0xff]  ;;  %1037 = vmatprep.subr.bf16.mxu1 %v1146_v47 }
 0x1e9   :  { %414 = vmax.xlane.f32.xlu1 %v413_v50  ;;  %v1148_v50 = vmov 0.0  }
 0x1ea   :  { %1016 = vmatprep.mubr.msk.f32.mxu1 %vm1147_vm7, %v1148_v50  ;;  %1023 = vmatprep.mubr.msk.f32.mxu0 %vm1147_vm7, %v1148_v50 }
 0x1ec   :  { %514 = vmax.xlane.f32.xlu0 %v513_v51 }
 0x1ed   :  { %511 = vmax.xlane.f32.xlu1 %v510_v52  ;;  %v1038_v52 = vpack.c.bf16 %v774_v49, %v773_v44 }
 0x1ef   :  { %1039 = vmatpush3.bf16.msra.mxu1 %v1038_v52 }
 0x1f0   :  { %697 = vmax.xlane.f32.xlu0 %v696_v53 }
 0x1f1   :  { %694 = vmax.xlane.f32.xlu1 %v693_v54 }
 0x1f4   :  { %611 = vmax.xlane.f32.xlu0 %v610_v55 }
 0x1f5   :  { %608 = vmax.xlane.f32.xlu1 %v607_v56 }
 0x1f8   :  { %428 = vmax.xlane.f32.xlu0 %v427_v57 }
 0x1f9   :  { %425 = vmax.xlane.f32.xlu1 %v424_v58 }
 0x1fc   :  { %525 = vmax.xlane.f32.xlu0 %v524_v59  ;;  %v1456_v59 = vld [vmem:[#allocation4 + $0x28] sm:$0xff] }
 0x1fd   :  { %522 = vmax.xlane.f32.xlu1 %v521_v60 }
 0x200   :  { %708 = vmax.xlane.f32.xlu0 %v707_v61  ;;  %v1458_v61 = vld [vmem:[#allocation4 + $0x20] sm:$0xff] }
 0x201   :  { %705 = vmax.xlane.f32.xlu1 %v704_v62 }
 0x204   :  { %622 = vmax.xlane.f32.xlu0 %v621_v63 }
 0x205   :  { %619 = vmax.xlane.f32.xlu1 %v618_v0 }
 0x208   :  { %439 = vmax.xlane.f32.xlu0 %v438_v1 }
 0x209   :  { %436 = vmax.xlane.f32.xlu1 %v435_v2 }
 0x20c   :  { %536 = vmax.xlane.f32.xlu0 %v535_v3 }
 0x20d   :  { %533 = vmax.xlane.f32.xlu1 %v532_v4 }
 0x210   :  { %719 = vmax.xlane.f32.xlu0 %v718_v5 }
 0x211   :  { %716 = vmax.xlane.f32.xlu1 %v715_v6 }
 0x214   :  { %633 = vmax.xlane.f32.xlu0 %v632_v7 }
 0x215   :  { %630 = vmax.xlane.f32.xlu1 %v629_v8 }
 0x218   :  { %450 = vmax.xlane.f32.xlu0 %v449_v9 }
 0x219   :  { %447 = vmax.xlane.f32.xlu1 %v446_v10 }
 0x21c   :  { %547 = vmax.xlane.f32.xlu0 %v546_v11 }
 0x21d   :  { %544 = vmax.xlane.f32.xlu1 %v543_v12 }
 0x220   :  { %730 = vmax.xlane.f32.xlu0 %v729_v13 }
 0x221   :  { %727 = vmax.xlane.f32.xlu1 %v726_v14 }
 0x224   :  { %644 = vmax.xlane.f32.xlu0 %v643_v15 }
 0x225   :  { %641 = vmax.xlane.f32.xlu1 %v640_v16 }
 0x228   :  { %741 = vmax.xlane.f32.xlu0 %v740_v19 }
 0x229   :  { %738 = vmax.xlane.f32.xlu1 %v737_v20 }
 0x239   :  { %v374_v21 = vpop.xlane.xlu0 %373 }
 0x23a   :  { %v371_v22 = vpop.xlane.xlu1 %370  ;;  %v376_v28 = vmul.f32 %v374_v21, %v1424_v23 }
 0x23b   :  { %v375_v30 = vmul.f32 %v371_v22, %v1428_v25 }
 0x23d   :  { %v385_v27 = vpop.xlane.xlu0 %384 }
 0x23e   :  { %v387_v29 = vmul.f32 %v385_v27, %v1426_v24  ;;  %v382_v17 = vpop.xlane.xlu1 %381 }
 0x23f   :  { %v386_v18 = vmul.f32 %v382_v17, %v1430_v26 }
 0x240   :  { %v389_v31 = vadd.f32 %v387_v29, %v376_v28 }
 0x241   :  { %v388_v32 = vadd.f32 %v386_v18, %v375_v30  ;;  %v471_v33 = vpop.xlane.xlu0 %470  ;;  %v1474_v30 = vld [vmem:[#allocation4 + $0x38] sm:$0xff] }
 0x242   :  { %v468_v34 = vpop.xlane.xlu1 %467  ;;  %v473_v36 = vmul.f32 %v471_v33, %v1424_v23 }
 0x243   :  { %v472_v39 = vmul.f32 %v468_v34, %v1428_v25 }
 0x245   :  { %v482_v35 = vpop.xlane.xlu0 %481 }
 0x246   :  { %v484_v37 = vmul.f32 %v482_v35, %v1426_v24  ;;  %v479_v38 = vpop.xlane.xlu1 %478 }
 0x247   :  { %v483_v40 = vmul.f32 %v479_v38, %v1430_v26 }
 0x248   :  { %v486_v41 = vadd.f32 %v484_v37, %v473_v36 }
 0x249   :  { %v485_v45 = vadd.f32 %v483_v40, %v472_v39  ;;  %v568_v46 = vpop.xlane.xlu0 %567 }
 0x24a   :  { %v565_v51 = vpop.xlane.xlu1 %564  ;;  %v570_v54 = vmul.f32 %v568_v46, %v1424_v23 }
 0x24b   :  { %v569_v57 = vmul.f32 %v565_v51, %v1428_v25 }
 0x24d   :  { %v579_v53 = vpop.xlane.xlu0 %578 }
 0x24e   :  { %v581_v55 = vmul.f32 %v579_v53, %v1426_v24  ;;  %v576_v56 = vpop.xlane.xlu1 %575 }
 0x24f   :  { %v580_v58 = vmul.f32 %v576_v56, %v1430_v26 }
 0x250   :  { %v583_v60 = vadd.f32 %v581_v55, %v570_v54 }
 0x251   :  { %v582_v62 = vadd.f32 %v580_v58, %v569_v57  ;;  %v396_v63 = vpop.xlane.xlu0 %395 }
 0x252   :  { %v398_v0 = vmul.f32 %v396_v63, %v1456_v59  ;;  %v393_v1 = vpop.xlane.xlu1 %392 }
 0x253   :  { %v397_v2 = vmul.f32 %v393_v1, %v1458_v61 }
 0x254   :  { %v400_v3 = vadd.f32 %v398_v0, %v389_v31 }
 0x255   :  { %v399_v4 = vadd.f32 %v397_v2, %v388_v32  ;;  %v493_v5 = vpop.xlane.xlu0 %492 }
 0x256   :  { %v495_v6 = vmul.f32 %v493_v5, %v1456_v59  ;;  %v490_v7 = vpop.xlane.xlu1 %489  ;;  %v1504_v5 = vld [vmem:[#allocation4 + $0x58] sm:$0xff] }
 0x257   :  { %v494_v8 = vmul.f32 %v490_v7, %v1458_v61 }
 0x258   :  { %v497_v9 = vadd.f32 %v495_v6, %v486_v41 }
 0x259   :  { %v496_v10 = vadd.f32 %v494_v8, %v485_v45  ;;  %v665_v11 = vpop.xlane.xlu0 %664  ;;  %v1509_v8 = vld [vmem:[#allocation4 + $0x50] sm:$0xff] }
 0x25a   :  { %v662_v12 = vpop.xlane.xlu1 %661  ;;  %v667_v14 = vmul.f32 %v665_v11, %v1424_v23  ;;  %v1514_v11 = vld [vmem:[#allocation4 + $0x68] sm:$0xff] }
 0x25b   :  { %v666_v19 = vmul.f32 %v662_v12, %v1428_v25 }
 0x25d   :  { %v676_v13 = vpop.xlane.xlu0 %675 }
 0x25e   :  { %v678_v15 = vmul.f32 %v676_v13, %v1426_v24  ;;  %v673_v16 = vpop.xlane.xlu1 %672  ;;  %v1478_v24 = vld [vmem:[#allocation4 + $0x30] sm:$0xff] }
 0x25f   :  { %v677_v20 = vmul.f32 %v673_v16, %v1430_v26 }
 0x260   :  { %v1468_v21 = vadd.f32 %v678_v15, %v667_v14  ;;  %v1518_v14 = vld [vmem:[#allocation4 + $0x60] sm:$0xff] }
 0x261   :  { %v1470_v22 = vadd.f32 %v677_v20, %v666_v19  ;;  %v590_v27 = vpop.xlane.xlu0 %589 }
 0x262   :  { %v592_v28 = vmul.f32 %v590_v27, %v1456_v59  ;;  %v587_v29 = vpop.xlane.xlu1 %586 }
 0x263   :  { %v591_v17 = vmul.f32 %v587_v29, %v1458_v61 }
 0x264   :  { %v1476_v23 = vadd.f32 %v592_v28, %v583_v60 }
 0x265   :  { %v1480_v18 = vadd.f32 %v591_v17, %v582_v62  ;;  %v407_v25 = vpop.xlane.xlu0 %406 }
 0x266   :  { %v409_v26 = vmul.f32 %v407_v25, %v1474_v30  ;;  %v404_v31 = vpop.xlane.xlu1 %403 }
 0x267   :  { %v408_v32 = vmul.f32 %v404_v31, %v1478_v24 }
 0x268   :  { %v411_v33 = vadd.f32 %v409_v26, %v400_v3  ;;  %v1500_v3 = vld [vmem:[#allocation4 + $0x48] sm:$0xff]  ;;  %v1526_v26 = vld [vmem:[#allocation4 + $0x78] sm:$0xff] }
 0x269   :  { %v410_v34 = vadd.f32 %v408_v32, %v399_v4  ;;  %v504_v35 = vpop.xlane.xlu0 %503  ;;  %v1502_v4 = vld [vmem:[#allocation4 + $0x40] sm:$0xff] }
 0x26a   :  { %v506_v36 = vmul.f32 %v504_v35, %v1474_v30  ;;  %v501_v37 = vpop.xlane.xlu1 %500 }
 0x26b   :  { %v505_v38 = vmul.f32 %v501_v37, %v1478_v24 }
 0x26c   :  { %v508_v39 = vadd.f32 %v506_v36, %v497_v9 }
 0x26d   :  { %v1486_v40 = vadd.f32 %v505_v38, %v496_v10  ;;  %v687_v41 = vpop.xlane.xlu0 %686 }
 0x26e   :  { %v684_v42 = vpop.xlane.xlu1 %683  ;;  %v689_v12 = vmul.f32 %v687_v41, %v1456_v59 }
 0x26f   :  { %v688_v15 = vmul.f32 %v684_v42, %v1458_v61 }
 0x270   :  { %v691_v31 = vadd.f32 %v689_v12, %v1468_v21 }
 0x271   :  { %v601_v43 = vpop.xlane.xlu0 %600  ;;  %v690_v36 = vadd.f32 %v688_v15, %v1470_v22 }
 0x272   :  { %v598_v44 = vpop.xlane.xlu1 %597  ;;  %v603_v61 = vmul.f32 %v601_v43, %v1474_v30 }
 0x273   :  { %v602_v37 = vmul.f32 %v598_v44, %v1478_v24 }
 0x274   :  { %v605_v44 = vadd.f32 %v603_v61, %v1476_v23 }
 0x275   :  { %v418_v45 = vpop.xlane.xlu0 %417 }
 0x276   :  { %v415_v46 = vpop.xlane.xlu1 %414  ;;  %v420_v7 = vmul.f32 %v418_v45, %v1500_v3 }
 0x277   :  { %v419_v10 = vmul.f32 %v415_v46, %v1502_v4 }
 0x278   :  { %v422_v20 = vadd.f32 %v420_v7, %v411_v33  ;;  %v1531_v33 = vld [vmem:[#allocation4 + $0x70] sm:$0xff] }
 0x279   :  { %v515_v47 = vpop.xlane.xlu0 %514  ;;  %v421_v17 = vadd.f32 %v419_v10, %v410_v34 }
 0x27a   :  { %v512_v48 = vpop.xlane.xlu1 %511  ;;  %v517_v27 = vmul.f32 %v515_v47, %v1500_v3 }
 0x27b   :  { %v516_v25 = vmul.f32 %v512_v48, %v1502_v4 }
 0x27c   :  { %v519_v42 = vadd.f32 %v517_v27, %v508_v39  ;;  %v604_v39 = vadd.f32 %v602_v37, %v1480_v18 }
 0x27d   :  { %v1488_v49 = vpop.xlane.xlu0 %697  ;;  %v518_v47 = vadd.f32 %v516_v25, %v1486_v40 }
 0x27e   :  { %v1490_v50 = vpop.xlane.xlu1 %694 }
 0x281   :  { %v612_v51 = vpop.xlane.xlu0 %611 }
 0x282   :  { %v1492_v52 = vpop.xlane.xlu1 %608 }
 0x283   :  { %v613_v40 = vmul.f32 %v1492_v52, %v1502_v4 }
 0x285   :  { %v429_v53 = vpop.xlane.xlu0 %428 }
 0x286   :  { %v426_v54 = vpop.xlane.xlu1 %425  ;;  %v431_v13 = vmul.f32 %v429_v53, %v1504_v5 }
 0x287   :  { %v430_v16 = vmul.f32 %v426_v54, %v1509_v8  ;;  %v614_v54 = vmul.f32 %v612_v51, %v1500_v3 }
 0x288   :  { %v433_v32 = vadd.f32 %v431_v13, %v422_v20 }
 0x289   :  { %v526_v55 = vpop.xlane.xlu0 %525  ;;  %v432_v34 = vadd.f32 %v430_v16, %v421_v17 }
 0x28a   :  { %v523_v56 = vpop.xlane.xlu1 %522  ;;  %v528_v35 = vmul.f32 %v526_v55, %v1504_v5 }
 0x28b   :  { %v527_v38 = vmul.f32 %v523_v56, %v1509_v8 }
 0x28c   :  { %v530_v55 = vadd.f32 %v528_v35, %v519_v42 }
 0x28d   :  { %v1494_v57 = vpop.xlane.xlu0 %708 }
 0x28e   :  { %v1496_v58 = vpop.xlane.xlu1 %705  ;;  %v711_v52 = vmul.f32 %v1494_v57, %v1500_v3 }
 0x291   :  { %v623_v60 = vpop.xlane.xlu0 %622 }
 0x292   :  { %v1498_v62 = vpop.xlane.xlu1 %619  ;;  %v625_v51 = vmul.f32 %v623_v60, %v1504_v5 }
 0x293   :  { %v624_v27 = vmul.f32 %v1498_v62, %v1509_v8 }
 0x295   :  { %v440_v63 = vpop.xlane.xlu0 %439 }
 0x296   :  { %v437_v0 = vpop.xlane.xlu1 %436  ;;  %v442_v28 = vmul.f32 %v440_v63, %v1514_v11  ;;  %v700_v63 = vmul.f32 %v1488_v49, %v1474_v30  ;;  %v699_v30 = vmul.f32 %v1490_v50, %v1478_v24  ;;  %v616_v49 = vadd.f32 %v614_v54, %v605_v44 }
 0x297   :  { %v441_v59 = vmul.f32 %v437_v0, %v1518_v14  ;;  %v529_v0 = vadd.f32 %v527_v38, %v518_v47  ;;  %v710_v24 = vmul.f32 %v1496_v58, %v1502_v4 }
 0x298   :  { %v444_v45 = vadd.f32 %v442_v28, %v433_v32  ;;  %v702_v25 = vadd.f32 %v700_v63, %v691_v31  ;;  %v627_v50 = vadd.f32 %v625_v51, %v616_v49  ;;  %v701_v3 = vadd.f32 %v699_v30, %v690_v36 }
 0x299   :  { %v537_v1 = vpop.xlane.xlu0 %536  ;;  %v443_v48 = vadd.f32 %v441_v59, %v432_v34  ;;  %v615_v59 = vadd.f32 %v613_v40, %v604_v39 }
 0x29a   :  { %v534_v2 = vpop.xlane.xlu1 %533  ;;  %v539_v46 = vmul.f32 %v537_v1, %v1514_v11  ;;  %v713_v31 = vadd.f32 %v711_v52, %v702_v25  ;;  %v712_v36 = vadd.f32 %v710_v24, %v701_v3 }
 0x29b   :  { %v538_v53 = vmul.f32 %v534_v2, %v1518_v14  ;;  %v626_v38 = vadd.f32 %v624_v27, %v615_v59 }
 0x29c   :  { %v541_v2 = vadd.f32 %v539_v46, %v530_v55 }
 0x29d   :  { %v1506_v6 = vpop.xlane.xlu0 %719  ;;  %v540_v13 = vadd.f32 %v538_v53, %v529_v0 }
 0x29e   :  { %v1511_v9 = vpop.xlane.xlu1 %716  ;;  %v722_v62 = vmul.f32 %v1506_v6, %v1504_v5 }
 0x2a0   :  { %v724_v47 = vadd.f32 %v722_v62, %v713_v31  ;;  %v979_v62 = vld [vmem:[%s1601_s6] ss:$0 sm:$0xff] }
 0x2a1   :  { %v634_v19 = vpop.xlane.xlu0 %633 }
 0x2a2   :  { %v631_v29 = vpop.xlane.xlu1 %630  ;;  %v636_v28 = vmul.f32 %v634_v19, %v1514_v11 }
 0x2a3   :  { %v635_v37 = vmul.f32 %v631_v29, %v1518_v14 }
 0x2a4   :  { %v638_v42 = vadd.f32 %v636_v28, %v627_v50 }
 0x2a5   :  { %v451_v41 = vpop.xlane.xlu0 %450 }
 0x2a6   :  { %v453_v21 = vmul.f32 %v451_v41, %v1526_v26  ;;  %v448_v43 = vpop.xlane.xlu1 %447  ;;  %v721_v41 = vmul.f32 %v1511_v9, %v1509_v8 }
 0x2a7   :  { %v452_v22 = vmul.f32 %v448_v43, %v1531_v33  ;;  %v637_v43 = vadd.f32 %v635_v37, %v626_v38  ;;  %v856_v37 = vld [vmem:[%s1602_s7] sm:$0xff] }
 0x2a8   :  { %v455_v56 = vadd.f32 %v453_v21, %v444_v45  ;;  %v723_v8 = vadd.f32 %v721_v41, %v712_v36  ;;  %v981_v41 = vld [vmem:[#allocation3] ss:$0 sm:$0xff] }
 0x2a9   :  { %v454_v1 = vadd.f32 %v452_v22, %v443_v48  ;;  %v548_v7 = vpop.xlane.xlu0 %547 }
 0x2aa   :  { %v457_v10 = vsel %vm261_vm1, %v455_v56, 0.0  ;;  %v550_v23 = vmul.f32 %v548_v7, %v1526_v26  ;;  %v545_v12 = vpop.xlane.xlu1 %544 }
 0x2ab   :  { %v456_v18 = vsel %vm261_vm1, %v454_v1, 0.0  ;;  %v549_v15 = vmul.f32 %v545_v12, %v1531_v33 }
 0x2ac   :  { %v458_v16 = vadd.f32 %v457_v10, %v456_v18  ;;  %v552_v20 = vadd.f32 %v550_v23, %v541_v2 }
 0x2ad   :  { %v551_v60 = vadd.f32 %v549_v15, %v540_v13  ;;  %v731_v17 = vpop.xlane.xlu0 %730 }
 0x2ae   :  { %v459_v61 = vrot.slane %v458_v16, 4  ;;  %v554_v32 = vsel %vm261_vm1, %v552_v20, 0.0  ;;  %v728_v35 = vpop.xlane.xlu1 %727  ;;  %v733_v4 = vmul.f32 %v731_v17, %v1514_v11 }
 0x2af   :  { %v553_v57 = vsel %vm261_vm1, %v551_v60, 0.0  ;;  %v732_v5 = vmul.f32 %v728_v35, %v1518_v14 }
 0x2b0   :  { %v460_v19 = vadd.f32 %v459_v61, %v458_v16  ;;  %v555_v34 = vadd.f32 %v554_v32, %v553_v57  ;;  %v735_v55 = vadd.f32 %v733_v4, %v724_v47  ;;  %v978_v32 = vld [vmem:[%s1599_s4] ss:$0 sm:$0xff]  ;;  %v857_v57 = vld [vmem:[%s1602_s7 + $0x8] sm:$0xff] }
 0x2b1   :  { %v645_v45 = vpop.xlane.xlu0 %644  ;;  %v734_v63 = vadd.f32 %v732_v5, %v723_v8  ;;  %v1041_v3 = vpack.c.bf16 %v857_v57, %v856_v37 }
 0x2b2   :  { %v461_v46 = vrot.slane %v460_v19, 2  ;;  %v556_v58 = vrot.slane %v555_v34, 4  ;;  %v647_v29 = vmul.f32 %v645_v45, %v1526_v26  ;;  %v642_v21 = vpop.xlane.xlu1 %641 }
 0x2b3   :  { %v646_v6 = vmul.f32 %v642_v21, %v1531_v33  ;;  %1042 = vmatpush3.bf16.msra.mxu0 %v1041_v3 }
 0x2b4   :  { %v462_v48 = vadd.f32 %v461_v46, %v460_v19  ;;  %v557_v53 = vadd.f32 %v556_v58, %v555_v34  ;;  %v649_v22 = vadd.f32 %v647_v29, %v638_v42 }
 0x2b5   :  { %v648_v9 = vadd.f32 %v646_v6, %v637_v43  ;;  %v742_v44 = vpop.xlane.xlu0 %741 }
 0x2b6   :  { %v558_v54 = vrot.slane %v557_v53, 2  ;;  %v651_v11 = vsel %vm261_vm1, %v649_v22, 0.0  ;;  %v744_v56 = vmul.f32 %v742_v44, %v1526_v26  ;;  %v739_v39 = vpop.xlane.xlu1 %738  ;;  %v463_v1 = vrot.slane %v462_v48, 1 }
 0x2b7   :  { %v650_v0 = vsel %vm261_vm1, %v648_v9, 0.0  ;;  %v743_v14 = vmul.f32 %v739_v39, %v1531_v33 }
 0x2b8   :  { %v559_v7 = vadd.f32 %v558_v54, %v557_v53  ;;  %v652_v40 = vadd.f32 %v651_v11, %v650_v0  ;;  %v746_v2 = vadd.f32 %v744_v56, %v735_v55  ;;  %v464_v18 = vadd.f32 %v463_v1, %v462_v48 }
 0x2b9   :  { %v745_v10 = vadd.f32 %v743_v14, %v734_v63 }
 0x2ba   :  { %v560_v23 = vrot.slane %v559_v7, 1  ;;  %v653_v12 = vrot.slane %v652_v40, 4  ;;  %v748_v51 = vsel %vm261_vm1, %v746_v2, 0.0 }
 0x2bb   :  { %v747_v13 = vsel %vm261_vm1, %v745_v10, 0.0 }
 0x2bc   :  { %v561_v26 = vadd.f32 %v560_v23, %v559_v7  ;;  %v654_v15 = vadd.f32 %v653_v12, %v652_v40  ;;  %v749_v30 = vadd.f32 %v748_v51, %v747_v13 }
 0x2be   :  { %v655_v49 = vrot.slane %v654_v15, 2  ;;  %v750_v16 = vrot.slane %v749_v30, 4  ;;  %v757_v20 = vsel %vm756_vm8, %v464_v18, %v561_v26 }
 0x2c0   :  { %v656_v33 = vadd.f32 %v655_v49, %v654_v15  ;;  %v751_v52 = vadd.f32 %v750_v16, %v749_v30 }
 0x2c2   :  { %v657_v27 = vrot.slane %v656_v33, 1  ;;  %v752_v28 = vrot.slane %v751_v52, 2 }
 0x2c4   :  { %v658_v60 = vadd.f32 %v657_v27, %v656_v33  ;;  %v753_v17 = vadd.f32 %v752_v28, %v751_v52 }
 0x2c6   :  { %v754_v25 = vrot.slane %v753_v17, 1  ;;  %v759_v59 = vsel %vm758_vm9, %v757_v20, %v658_v60 }
 0x2c8   :  { %v755_v61 = vadd.f32 %v754_v25, %v753_v17 }
 0x2ca   :  { %v761_v35 = vsel %vm760_vm10, %v759_v59, %v755_v61 }
 0x2cb   :  { %v769_v24 = vadd.f32 %v978_v32, %v761_v35 }
 0x2cd   :  { %v770_v50 = vmax.f32 %v769_v24, 0.0 }
 0x2cf   :  { %1017 = vmatmul.mubr.msk.f32.vlgmr.msra.gmra.mrb[0].mxu1 %vm261_vm1, %v770_v50  ;;  %vm945_vm1 = vcmask 3072  }
 0x3a2   :  { %v851_v19 = vpop.f32.mrb[0].mxu1 }
 0x3a3   :  { %v852_v34 = vadd.f32 %v979_v62, %v851_v19  ;;  %v1018_v31 = vpop.f32.mrb[1].mxu1 }
 0x3a5   :  { %v855_v38 = vmax.f32 %v852_v34, 0.0 }
 0x3a7   :  { %1024 = vmatmul.mubr.msk.f32.vlgmr.msra.gmra.mrb[2].mxu0 %vm865_vm11, %v855_v38 }
 0x47a   :  { %v935_v42 = vpop.f32.mrb[2].mxu0 }
 0x47b   :  { %v936_v45 = vadd.f32 %v981_v41, %v935_v42  ;;  %v1025_v46 = vpop.f32.mrb[3].mxu0 }
 0x47d   :  { %v939_v58 = vsub.f32 0.0, %v936_v45 }
 0x47f   :  { %v940_v4 = vmul.f32 1.442695, %v939_v58 }
 0x481   :  { %1083 = vpow2.f32 %v940_v4 }
 0x48b   :  { %v1084_v29 = vpop.eup %1083 }
 0x48c   :  { %v942_v21 = vadd.f32 1.0, %v1084_v29 }
 0x48e   :  { %1085 = vrcp.f32 %v942_v21 }
 0x498   :  { %v1086_v36 = vpop.eup %1085 }
 0x499   :  { %946 = vst.msk [vmem:[%s1604_s9] sm:$0xf] %vm945_vm1, %v1086_v36 }
 0x49a   :  { %951 = vsyncpa [#allocation5], 1 }

</bundles_post_ra>
